<compile_context>
chip_gen: v7x
topology: tpu7x:2x2x1
jax: 0.10.0
libtpu: 0.0.40
codegen_flags: <defaults>
</compile_context>

<pallas_src>
import functools

import jax
import jax.numpy as jnp
from jax.experimental import pallas as pl

NEG_SLOPE = 0.2  # PyG GATConv default LeakyReLU slope


# ----------------------------- Fused Pallas kernel -------------------------- #

def _fused_gat_kernel(x_ref, adj_ref, w1c_ref, b1_ref, w2c_ref, b2_ref,
                      pool_ref, wfc_ref, bfc_ref, out_ref,
                      *, heads1, c1, heads2, c2):
    """Whole-model forward in a single kernel invocation.

    x_ref    [n, F_in]                 node features (all graphs, block-contiguous)
    adj_ref  [n, n]  int8              adj[i, j] != 0 iff edge j -> i (self loops incl.)
    w1c_ref  [F_in, H1*C1 + 2*H1]      [W1 | W1@a_src1_bd | W1@a_dst1_bd]
    b1_ref   [H1, 1, C1]               layer-1 bias, head-major
    w2c_ref  [H1, C1, H2*C2 + 2*H2]    [W2 | W2@a_src2_bd | W2@a_dst2_bd], head-major rows
    b2_ref   [1, C2]                   layer-2 bias (concat=False)
    pool_ref [G, n]                    per-graph mean-pool matrix
    wfc_ref  [C2, n_classes]; bfc_ref  [1, n_classes]
    out_ref  [G, n_classes]
    """
    x = x_ref[...]
    n = x.shape[0]
    # Edge mask hoisted once; shared by every head of both layers.
    # (Self loops guarantee every row has at least one unmasked entry, so the
    #  -1e30 mask + max trick never degenerates to a uniform distribution.)
    mask = adj_ref[...].astype(jnp.int32) > 0                 # [n, n]
    neg_inf = jnp.float32(-1e30)

    def batched_attention(z, heads, c):
        """z = [proj-features | src-scores | dst-scores] -> list of per-head [n, c]."""
        hc = heads * c
        xp = z[:, :hc]                                        # [n, H*C]
        a_s = z[:, hc:hc + heads].T                           # [H, n]
        a_d = z[:, hc + heads:hc + 2 * heads].T               # [H, n]
        # All heads at once: one LeakyReLU / mask / max / exp / sum on [H, n, n].
        e = a_d[:, :, None] + a_s[:, None, :]                 # [H, n_dst, n_src]
        e = jnp.where(e >= 0, e, NEG_SLOPE * e)               # LeakyReLU(0.2)
        e = jnp.where(mask, e, neg_inf)                       # mask (broadcast over H)
        e = e - jnp.max(e, axis=-1, keepdims=True)
        p = jnp.exp(e)
        p = p / jnp.sum(p, axis=-1, keepdims=True)            # exact softmax
        # Per-head aggregation has to be separate MXU matmuls anyway.
        return [jnp.dot(p[h], xp[:, h * c:(h + 1) * c],
                        preferred_element_type=jnp.float32)
                for h in range(heads)]

    # ---- layer 1: GATConv(F_in -> C1, H1 heads, concat) + bias + ReLU --------
    z1 = jnp.dot(x, w1c_ref[...], preferred_element_type=jnp.float32)   # [n, H1*(C1+2)]
    o1 = batched_attention(z1, heads1, c1)                              # H1 x [n, C1]

    # ---- layer-2 input: layer-1 "concat" folded into a per-head contraction --
    b1 = b1_ref[...]                                                    # [H1, 1, C1]
    w2c = w2c_ref[...]                                                  # [H1, C1, H2*(C2+2)]
    z2 = jnp.zeros((n, w2c.shape[2]), jnp.float32)
    for h in range(heads1):
        h1_h = jnp.maximum(o1[h] + b1[h], 0.0)                          # bias + ReLU
        z2 = z2 + jnp.dot(h1_h, w2c[h], preferred_element_type=jnp.float32)

    # ---- layer 2: GATConv(H1*C1 -> C2, H2 heads, concat=False -> mean) -------
    o2 = batched_attention(z2, heads2, c2)                              # H2 x [n, C2]
    h2 = o2[0]
    for h in range(1, heads2):
        h2 = h2 + o2[h]
    h2 = h2 * jnp.float32(1.0 / heads2) + b2_ref[...]                   # [n, C2]

    # ---- global mean pool (per graph) + Linear --------------------------------
    pooled = jnp.dot(pool_ref[...], h2, preferred_element_type=jnp.float32)   # [G, C2]
    out_ref[...] = jnp.dot(pooled, wfc_ref[...],
                           preferred_element_type=jnp.float32) + bfc_ref[...]


# ----------------------------- Host-side weight folding --------------------- #

def _block_diag_att(a):
    """[H, C] attention vector -> block-diagonal [H*C, H] such that
    (xp @ bd)[n, h] = sum_c xp[n, h*C + c] * a[h, c]."""
    h, c = a.shape
    eye = jnp.eye(h, dtype=jnp.float32)
    return (a.astype(jnp.float32)[:, :, None] * eye[:, None, :]).reshape(h * c, h)


def prepare_params(params):
    """Fold the attention vectors into the layer weights (done once, on the host)."""
    hi = jax.lax.Precision.HIGHEST
    heads1, c1 = params["asrc1"].shape
    heads2, c2 = params["asrc2"].shape
    w1, w2 = params["w1"], params["w2"]
    w1_cat = jnp.concatenate(
        [w1,
         jnp.dot(w1, _block_diag_att(params["asrc1"]), precision=hi),
         jnp.dot(w1, _block_diag_att(params["adst1"]), precision=hi)], axis=1)
    w2_cat = jnp.concatenate(
        [w2,
         jnp.dot(w2, _block_diag_att(params["asrc2"]), precision=hi),
         jnp.dot(w2, _block_diag_att(params["adst2"]), precision=hi)], axis=1)
    return {
        "w1_cat": w1_cat,                                          # [F_in, H1*(C1+2)]
        "b1": params["b1"].reshape(heads1, 1, c1),                 # [H1, 1, C1]
        "w2_cat": w2_cat.reshape(heads1, c1, heads2 * (c2 + 2)),   # [H1, C1, H2*(C2+2)]
        "b2": params["b2"],                                        # [1, C2]
        "w_fc": params["w_fc"],
        "b_fc": params["b_fc"],
    }


# ----------------------------- Wrapper -------------------------------------- #

def gat_model_forward(prep, x, adj, pool):
    """Eval-mode forward of OptimizedGATModel (dropouts are identity).

    x    [n_nodes, F_in]        node features (data.x), graphs block-contiguous
    adj  [n_nodes, n_nodes] i8  dense block-diagonal adjacency (with self loops)
    pool [n_graphs, n_nodes]    per-graph mean-pool matrix (built from data.batch)
    """
    n_graphs = pool.shape[0]
    heads1, _, c1 = prep["b1"].shape
    c2 = prep["b2"].shape[1]
    heads2 = prep["w2_cat"].shape[2] // (c2 + 2)
    n_classes = prep["w_fc"].shape[1]

    kernel = functools.partial(_fused_gat_kernel, heads1=heads1, c1=c1,
                               heads2=heads2, c2=c2)

    def full(arr):  # whole array as a single resident VMEM block
        return pl.BlockSpec(arr.shape, lambda i: (0,) * arr.ndim)

    # TODO(synk): for large graph batches on v7x, reintroduce a graph grid axis
    # with pltpu.CORE_PARALLEL (and an int8 source-node-tiled adjacency with
    # online-softmax) once the O(n^2) adjacency no longer fits a single block.
    out = pl.pallas_call(
        kernel,
        out_shape=jax.ShapeDtypeStruct((n_graphs, n_classes), jnp.float32),
        grid=(1,),
        in_specs=[full(x), full(adj), full(prep["w1_cat"]), full(prep["b1"]),
                  full(prep["w2_cat"]), full(prep["b2"]), full(pool),
                  full(prep["w_fc"]), full(prep["b_fc"])],
        out_specs=pl.BlockSpec((n_graphs, n_classes), lambda i: (0, 0)),
    )(x, adj, prep["w1_cat"], prep["b1"], prep["w2_cat"], prep["b2"], pool,
      prep["w_fc"], prep["b_fc"])
    return out


# ----------------------------- Pure-JAX reference --------------------------- #

def _gat_layer_ref(x, w, a_src, a_dst, bias, adj, heads, out_ch, concat, relu_out):
    hi = jax.lax.Precision.HIGHEST
    xp = jnp.dot(x, w, precision=hi)
    outs = []
    for h in range(heads):
        xh = xp[:, h * out_ch:(h + 1) * out_ch]
        a_s = (xh * a_src[h]).sum(-1)
        a_d = (xh * a_dst[h]).sum(-1)
        e = a_d[:, None] + a_s[None, :]
        e = jnp.where(e >= 0, e, NEG_SLOPE * e)
        e = jnp.where(adj > 0, e, -1e30)
        attn = jax.nn.softmax(e, axis=-1)
        outs.append(jnp.dot(attn, xh, precision=hi))
    out = jnp.concatenate(outs, -1) if concat else jnp.mean(jnp.stack(outs), 0)
    out = out + bias
    return jnp.maximum(out, 0.0) if relu_out else out


def _model_ref(params, x, adj, pool_mat):
    hi = jax.lax.Precision.HIGHEST
    h1 = _gat_layer_ref(x, params["w1"], params["asrc1"], params["adst1"],
                        params["b1"], adj, 6, 64, True, True)
    h2 = _gat_layer_ref(h1, params["w2"], params["asrc2"], params["adst2"],
                        params["b2"], adj, 3, 16, False, False)
    pooled = jnp.dot(pool_mat, h2, precision=hi)
    return jnp.dot(pooled, params["w_fc"], precision=hi) + params["b_fc"]


# ----------------------------- Main ------------------------------------------ #

if __name__ == "__main__":
    num_node_features = 8
    num_classes = 3
    n_graphs = 2
    nodes_per_graph = 8
    n_nodes = n_graphs * nodes_per_graph

    key = jax.random.PRNGKey(0)
    ks = jax.random.split(key, 12)

    def normal(k, shape, scale=0.2):
        return (scale * jax.random.normal(k, shape)).astype(jnp.float32)

    params = {
        # GATConv(8, 64, heads=6, concat=True)
        "w1":    normal(ks[0], (num_node_features, 6 * 64)),
        "asrc1": normal(ks[1], (6, 64)),
        "adst1": normal(ks[2], (6, 64)),
        "b1":    normal(ks[3], (1, 6 * 64)),
        # GATConv(384, 16, heads=3, concat=False)
        "w2":    normal(ks[4], (6 * 64, 3 * 16)),
        "asrc2": normal(ks[5], (3, 16)),
        "adst2": normal(ks[6], (3, 16)),
        "b2":    normal(ks[7], (1, 16)),
        # Linear(16, num_classes)
        "w_fc":  normal(ks[8], (16, num_classes)),
        "b_fc":  normal(ks[9], (1, num_classes)),
    }

    # Node features (data.x)
    x = normal(ks[10], (n_nodes, num_node_features), scale=1.0)

    # Deterministic edge_index: a ring plus chords within each graph of 8 nodes.
    src_list, dst_list = [], []
    for g in range(n_graphs):
        base = g * nodes_per_graph
        for i in range(nodes_per_graph):
            src_list += [base + i, base + i]
            dst_list += [base + (i + 1) % nodes_per_graph,
                         base + (i + 3) % nodes_per_graph]
    edge_index = jnp.array([src_list, dst_list], dtype=jnp.int32)   # [2, E]

    # Dense int8 adjacency: adj[dst, src] = 1, plus self loops (PyG default).
    # Graphs are block-diagonal, so one kernel invocation handles the whole batch.
    adj = jnp.zeros((n_nodes, n_nodes), jnp.int8)
    adj = adj.at[edge_index[1], edge_index[0]].set(1)
    adj = adj.at[jnp.arange(n_nodes), jnp.arange(n_nodes)].set(1)

    # data.batch -> per-graph mean-pool matrix (handles ragged graphs too).
    batch = jnp.repeat(jnp.arange(n_graphs, dtype=jnp.int32), nodes_per_graph)
    onehot = (batch[None, :] == jnp.arange(n_graphs)[:, None]).astype(jnp.float32)
    pool_mat = onehot / onehot.sum(axis=1, keepdims=True)

    prep = prepare_params(params)          # host-side weight folding, done once
    fwd = jax.jit(gat_model_forward)
    out = jax.block_until_ready(fwd(prep, x, adj, pool_mat))
    ref = _model_ref(params, x, adj, pool_mat)

    assert out.shape == (n_graphs, num_classes), out.shape
    # Softmax normalization is now exact (no approx reciprocal): tolerance
    # tightened from 5e-3 to 1e-3; remaining slack covers MXU f32 reassociation.
    assert jnp.allclose(out, ref, atol=1e-3, rtol=1e-3), (out, ref)

    # TODO(synk): dropout (p=0.3 on features, p=0.4 on attention) is a
    # training-mode no-op; eval-mode semantics are reproduced exactly.
    print("KERNEL_OK")
</pallas_src>

<mosaic_0001>
module attributes {stable_mosaic.version = 11 : i64} {
  func.func @_fused_gat_kernel(%arg0: i32, %arg1: memref<16x8xf32, #tpu.memory_space<vmem>>, %arg2: memref<16x16xi8, #tpu.memory_space<vmem>>, %arg3: memref<8x396xf32, #tpu.memory_space<vmem>>, %arg4: memref<6x1x64xf32, #tpu.memory_space<vmem>>, %arg5: memref<6x64x54xf32, #tpu.memory_space<vmem>>, %arg6: memref<1x16xf32, #tpu.memory_space<vmem>>, %arg7: memref<2x16xf32, #tpu.memory_space<vmem>>, %arg8: memref<16x3xf32, #tpu.memory_space<vmem>>, %arg9: memref<1x3xf32, #tpu.memory_space<vmem>>, %arg10: memref<2x3xf32, #tpu.memory_space<vmem>>) attributes {dimension_semantics = [#tpu.dimension_semantics<arbitrary>], iteration_bounds = array<i64: 1>, scalar_prefetch = 0 : i64, scratch_operands = 0 : i64, tpu.core_type = #tpu.core_type<tc>, window_params = [{pipeline_mode = #tpu.pipeline_mode<synchronous>, transform_indices = @transform_0, window_bounds = array<i64: 16, 8>}, {pipeline_mode = #tpu.pipeline_mode<synchronous>, transform_indices = @transform_1, window_bounds = array<i64: 16, 16>}, {pipeline_mode = #tpu.pipeline_mode<synchronous>, transform_indices = @transform_2, window_bounds = array<i64: 8, 396>}, {pipeline_mode = #tpu.pipeline_mode<synchronous>, transform_indices = @transform_3, window_bounds = array<i64: 6, 1, 64>}, {pipeline_mode = #tpu.pipeline_mode<synchronous>, transform_indices = @transform_4, window_bounds = array<i64: 6, 64, 54>}, {pipeline_mode = #tpu.pipeline_mode<synchronous>, transform_indices = @transform_5, window_bounds = array<i64: 1, 16>}, {pipeline_mode = #tpu.pipeline_mode<synchronous>, transform_indices = @transform_6, window_bounds = array<i64: 2, 16>}, {pipeline_mode = #tpu.pipeline_mode<synchronous>, transform_indices = @transform_7, window_bounds = array<i64: 16, 3>}, {pipeline_mode = #tpu.pipeline_mode<synchronous>, transform_indices = @transform_8, window_bounds = array<i64: 1, 3>}, {pipeline_mode = #tpu.pipeline_mode<synchronous>, transform_indices = @transform_9, window_bounds = array<i64: 2, 3>}]} {
    %c0 = arith.constant 0 : index
    %c0_0 = arith.constant 0 : index
    %0 = vector.load %arg1[%c0, %c0_0] : memref<16x8xf32, #tpu.memory_space<vmem>>, vector<16x8xf32>
    %c0_1 = arith.constant 0 : index
    %c0_2 = arith.constant 0 : index
    %1 = vector.load %arg2[%c0_1, %c0_2] : memref<16x16xi8, #tpu.memory_space<vmem>>, vector<16x16xi8>
    %2 = arith.extsi %1 : vector<16x16xi8> to vector<16x16xi32>
    %c0_i32 = arith.constant 0 : i32
    %3 = vector.broadcast %c0_i32 : i32 to vector<16x16xi32>
    %4 = arith.cmpi sgt, %2, %3 : vector<16x16xi32>
    %c0_3 = arith.constant 0 : index
    %c0_4 = arith.constant 0 : index
    %5 = vector.load %arg3[%c0_3, %c0_4] : memref<8x396xf32, #tpu.memory_space<vmem>>, vector<8x396xf32>
    %cst = arith.constant dense<0.000000e+00> : vector<16x396xf32>
    %6 = tpu.matmul %0, %5, %cst {dimension_numbers = #tpu.dot_dimension_numbers<[1], [0], [0], [1], [0, 0, 1, 1], [], []>} : vector<16x8xf32>, vector<8x396xf32>, vector<16x396xf32> -> vector<16x396xf32>
    %7 = vector.extract_strided_slice %6 {offsets = [0, 0], sizes = [16, 384], strides = [1, 1]} : vector<16x396xf32> to vector<16x384xf32>
    %8 = vector.extract_strided_slice %6 {offsets = [0, 384], sizes = [16, 6], strides = [1, 1]} : vector<16x396xf32> to vector<16x6xf32>
    %9 = tpu.transpose %8, [1, 0] : vector<16x6xf32> -> vector<6x16xf32>
    %10 = vector.extract_strided_slice %6 {offsets = [0, 390], sizes = [16, 6], strides = [1, 1]} : vector<16x396xf32> to vector<16x6xf32>
    %11 = tpu.transpose %10, [1, 0] : vector<16x6xf32> -> vector<6x16xf32>
    %12 = vector.shape_cast %11 : vector<6x16xf32> to vector<6x16x1xf32>
    %13 = vector.shape_cast %9 : vector<6x16xf32> to vector<6x1x16xf32>
    %14 = vector.broadcast %12 : vector<6x16x1xf32> to vector<6x16x16xf32>
    %15 = vector.broadcast %13 : vector<6x1x16xf32> to vector<6x16x16xf32>
    %16 = arith.addf %14, %15 : vector<6x16x16xf32>
    %cst_5 = arith.constant 0.000000e+00 : f32
    %17 = vector.broadcast %cst_5 : f32 to vector<6x16x16xf32>
    %18 = arith.cmpf oge, %16, %17 : vector<6x16x16xf32>
    %cst_6 = arith.constant 2.000000e-01 : f32
    %19 = vector.broadcast %cst_6 : f32 to vector<6x16x16xf32>
    %20 = arith.mulf %19, %16 : vector<6x16x16xf32>
    %21 = arith.select %18, %16, %20 : vector<6x16x16xi1>, vector<6x16x16xf32>
    %cst_7 = arith.constant -1.000000e+30 : f32
    %22 = vector.shape_cast %4 : vector<16x16xi1> to vector<1x16x16xi1>
    %23 = vector.broadcast %22 : vector<1x16x16xi1> to vector<6x16x16xi1>
    %24 = vector.broadcast %cst_7 : f32 to vector<6x16x16xf32>
    %25 = arith.select %23, %21, %24 : vector<6x16x16xi1>, vector<6x16x16xf32>
    %cst_8 = arith.constant dense<0xFF800000> : vector<6x16xf32>
    %26 = vector.multi_reduction <maximumf>, %25, %cst_8 [2] : vector<6x16x16xf32> to vector<6x16xf32>
    %27 = vector.shape_cast %26 : vector<6x16xf32> to vector<6x16x1xf32>
    %28 = vector.broadcast %27 : vector<6x16x1xf32> to vector<6x16x16xf32>
    %29 = arith.subf %25, %28 : vector<6x16x16xf32>
    %30 = math.exp %29 : vector<6x16x16xf32>
    %cst_9 = arith.constant dense<0.000000e+00> : vector<6x16xf32>
    %31 = vector.multi_reduction <add>, %30, %cst_9 [2] : vector<6x16x16xf32> to vector<6x16xf32>
    %32 = vector.shape_cast %31 : vector<6x16xf32> to vector<6x16x1xf32>
    %33 = vector.broadcast %32 : vector<6x16x1xf32> to vector<6x16x16xf32>
    %34 = arith.divf %30, %33 : vector<6x16x16xf32>
    %35 = vector.extract_strided_slice %34 {offsets = [0, 0, 0], sizes = [1, 16, 16], strides = [1, 1, 1]} : vector<6x16x16xf32> to vector<1x16x16xf32>
    %36 = vector.shape_cast %35 : vector<1x16x16xf32> to vector<16x16xf32>
    %37 = vector.extract_strided_slice %7 {offsets = [0, 0], sizes = [16, 64], strides = [1, 1]} : vector<16x384xf32> to vector<16x64xf32>
    %cst_10 = arith.constant dense<0.000000e+00> : vector<16x64xf32>
    %38 = tpu.matmul %36, %37, %cst_10 {dimension_numbers = #tpu.dot_dimension_numbers<[1], [0], [0], [1], [0, 0, 1, 1], [], []>} : vector<16x16xf32>, vector<16x64xf32>, vector<16x64xf32> -> vector<16x64xf32>
    %39 = vector.extract_strided_slice %34 {offsets = [1, 0, 0], sizes = [1, 16, 16], strides = [1, 1, 1]} : vector<6x16x16xf32> to vector<1x16x16xf32>
    %40 = vector.shape_cast %39 : vector<1x16x16xf32> to vector<16x16xf32>
    %41 = vector.extract_strided_slice %7 {offsets = [0, 64], sizes = [16, 64], strides = [1, 1]} : vector<16x384xf32> to vector<16x64xf32>
    %cst_11 = arith.constant dense<0.000000e+00> : vector<16x64xf32>
    %42 = tpu.matmul %40, %41, %cst_11 {dimension_numbers = #tpu.dot_dimension_numbers<[1], [0], [0], [1], [0, 0, 1, 1], [], []>} : vector<16x16xf32>, vector<16x64xf32>, vector<16x64xf32> -> vector<16x64xf32>
    %43 = vector.extract_strided_slice %34 {offsets = [2, 0, 0], sizes = [1, 16, 16], strides = [1, 1, 1]} : vector<6x16x16xf32> to vector<1x16x16xf32>
    %44 = vector.shape_cast %43 : vector<1x16x16xf32> to vector<16x16xf32>
    %45 = vector.extract_strided_slice %7 {offsets = [0, 128], sizes = [16, 64], strides = [1, 1]} : vector<16x384xf32> to vector<16x64xf32>
    %cst_12 = arith.constant dense<0.000000e+00> : vector<16x64xf32>
    %46 = tpu.matmul %44, %45, %cst_12 {dimension_numbers = #tpu.dot_dimension_numbers<[1], [0], [0], [1], [0, 0, 1, 1], [], []>} : vector<16x16xf32>, vector<16x64xf32>, vector<16x64xf32> -> vector<16x64xf32>
    %47 = vector.extract_strided_slice %34 {offsets = [3, 0, 0], sizes = [1, 16, 16], strides = [1, 1, 1]} : vector<6x16x16xf32> to vector<1x16x16xf32>
    %48 = vector.shape_cast %47 : vector<1x16x16xf32> to vector<16x16xf32>
    %49 = vector.extract_strided_slice %7 {offsets = [0, 192], sizes = [16, 64], strides = [1, 1]} : vector<16x384xf32> to vector<16x64xf32>
    %cst_13 = arith.constant dense<0.000000e+00> : vector<16x64xf32>
    %50 = tpu.matmul %48, %49, %cst_13 {dimension_numbers = #tpu.dot_dimension_numbers<[1], [0], [0], [1], [0, 0, 1, 1], [], []>} : vector<16x16xf32>, vector<16x64xf32>, vector<16x64xf32> -> vector<16x64xf32>
    %51 = vector.extract_strided_slice %34 {offsets = [4, 0, 0], sizes = [1, 16, 16], strides = [1, 1, 1]} : vector<6x16x16xf32> to vector<1x16x16xf32>
    %52 = vector.shape_cast %51 : vector<1x16x16xf32> to vector<16x16xf32>
    %53 = vector.extract_strided_slice %7 {offsets = [0, 256], sizes = [16, 64], strides = [1, 1]} : vector<16x384xf32> to vector<16x64xf32>
    %cst_14 = arith.constant dense<0.000000e+00> : vector<16x64xf32>
    %54 = tpu.matmul %52, %53, %cst_14 {dimension_numbers = #tpu.dot_dimension_numbers<[1], [0], [0], [1], [0, 0, 1, 1], [], []>} : vector<16x16xf32>, vector<16x64xf32>, vector<16x64xf32> -> vector<16x64xf32>
    %55 = vector.extract_strided_slice %34 {offsets = [5, 0, 0], sizes = [1, 16, 16], strides = [1, 1, 1]} : vector<6x16x16xf32> to vector<1x16x16xf32>
    %56 = vector.shape_cast %55 : vector<1x16x16xf32> to vector<16x16xf32>
    %57 = vector.extract_strided_slice %7 {offsets = [0, 320], sizes = [16, 64], strides = [1, 1]} : vector<16x384xf32> to vector<16x64xf32>
    %cst_15 = arith.constant dense<0.000000e+00> : vector<16x64xf32>
    %58 = tpu.matmul %56, %57, %cst_15 {dimension_numbers = #tpu.dot_dimension_numbers<[1], [0], [0], [1], [0, 0, 1, 1], [], []>} : vector<16x16xf32>, vector<16x64xf32>, vector<16x64xf32> -> vector<16x64xf32>
    %c0_16 = arith.constant 0 : index
    %c0_17 = arith.constant 0 : index
    %c0_18 = arith.constant 0 : index
    %59 = vector.load %arg4[%c0_16, %c0_17, %c0_18] : memref<6x1x64xf32, #tpu.memory_space<vmem>>, vector<6x1x64xf32>
    %c0_19 = arith.constant 0 : index
    %c0_20 = arith.constant 0 : index
    %c0_21 = arith.constant 0 : index
    %60 = vector.load %arg5[%c0_19, %c0_20, %c0_21] : memref<6x64x54xf32, #tpu.memory_space<vmem>>, vector<6x64x54xf32>
    %cst_22 = arith.constant 0.000000e+00 : f32
    %61 = vector.broadcast %cst_22 : f32 to vector<16x54xf32>
    %62 = vector.extract_strided_slice %59 {offsets = [0, 0, 0], sizes = [1, 1, 64], strides = [1, 1, 1]} : vector<6x1x64xf32> to vector<1x1x64xf32>
    %63 = vector.shape_cast %62 : vector<1x1x64xf32> to vector<1x64xf32>
    %64 = vector.broadcast %63 : vector<1x64xf32> to vector<16x64xf32>
    %65 = arith.addf %38, %64 : vector<16x64xf32>
    %cst_23 = arith.constant 0.000000e+00 : f32
    %66 = vector.broadcast %cst_23 : f32 to vector<16x64xf32>
    %67 = arith.maximumf %65, %66 : vector<16x64xf32>
    %68 = vector.extract_strided_slice %60 {offsets = [0, 0, 0], sizes = [1, 64, 54], strides = [1, 1, 1]} : vector<6x64x54xf32> to vector<1x64x54xf32>
    %69 = vector.shape_cast %68 : vector<1x64x54xf32> to vector<64x54xf32>
    %cst_24 = arith.constant dense<0.000000e+00> : vector<16x54xf32>
    %70 = tpu.matmul %67, %69, %cst_24 {dimension_numbers = #tpu.dot_dimension_numbers<[1], [0], [0], [1], [0, 0, 1, 1], [], []>} : vector<16x64xf32>, vector<64x54xf32>, vector<16x54xf32> -> vector<16x54xf32>
    %71 = arith.addf %61, %70 : vector<16x54xf32>
    %72 = vector.extract_strided_slice %59 {offsets = [1, 0, 0], sizes = [1, 1, 64], strides = [1, 1, 1]} : vector<6x1x64xf32> to vector<1x1x64xf32>
    %73 = vector.shape_cast %72 : vector<1x1x64xf32> to vector<1x64xf32>
    %74 = vector.broadcast %73 : vector<1x64xf32> to vector<16x64xf32>
    %75 = arith.addf %42, %74 : vector<16x64xf32>
    %cst_25 = arith.constant 0.000000e+00 : f32
    %76 = vector.broadcast %cst_25 : f32 to vector<16x64xf32>
    %77 = arith.maximumf %75, %76 : vector<16x64xf32>
    %78 = vector.extract_strided_slice %60 {offsets = [1, 0, 0], sizes = [1, 64, 54], strides = [1, 1, 1]} : vector<6x64x54xf32> to vector<1x64x54xf32>
    %79 = vector.shape_cast %78 : vector<1x64x54xf32> to vector<64x54xf32>
    %cst_26 = arith.constant dense<0.000000e+00> : vector<16x54xf32>
    %80 = tpu.matmul %77, %79, %cst_26 {dimension_numbers = #tpu.dot_dimension_numbers<[1], [0], [0], [1], [0, 0, 1, 1], [], []>} : vector<16x64xf32>, vector<64x54xf32>, vector<16x54xf32> -> vector<16x54xf32>
    %81 = arith.addf %71, %80 : vector<16x54xf32>
    %82 = vector.extract_strided_slice %59 {offsets = [2, 0, 0], sizes = [1, 1, 64], strides = [1, 1, 1]} : vector<6x1x64xf32> to vector<1x1x64xf32>
    %83 = vector.shape_cast %82 : vector<1x1x64xf32> to vector<1x64xf32>
    %84 = vector.broadcast %83 : vector<1x64xf32> to vector<16x64xf32>
    %85 = arith.addf %46, %84 : vector<16x64xf32>
    %cst_27 = arith.constant 0.000000e+00 : f32
    %86 = vector.broadcast %cst_27 : f32 to vector<16x64xf32>
    %87 = arith.maximumf %85, %86 : vector<16x64xf32>
    %88 = vector.extract_strided_slice %60 {offsets = [2, 0, 0], sizes = [1, 64, 54], strides = [1, 1, 1]} : vector<6x64x54xf32> to vector<1x64x54xf32>
    %89 = vector.shape_cast %88 : vector<1x64x54xf32> to vector<64x54xf32>
    %cst_28 = arith.constant dense<0.000000e+00> : vector<16x54xf32>
    %90 = tpu.matmul %87, %89, %cst_28 {dimension_numbers = #tpu.dot_dimension_numbers<[1], [0], [0], [1], [0, 0, 1, 1], [], []>} : vector<16x64xf32>, vector<64x54xf32>, vector<16x54xf32> -> vector<16x54xf32>
    %91 = arith.addf %81, %90 : vector<16x54xf32>
    %92 = vector.extract_strided_slice %59 {offsets = [3, 0, 0], sizes = [1, 1, 64], strides = [1, 1, 1]} : vector<6x1x64xf32> to vector<1x1x64xf32>
    %93 = vector.shape_cast %92 : vector<1x1x64xf32> to vector<1x64xf32>
    %94 = vector.broadcast %93 : vector<1x64xf32> to vector<16x64xf32>
    %95 = arith.addf %50, %94 : vector<16x64xf32>
    %cst_29 = arith.constant 0.000000e+00 : f32
    %96 = vector.broadcast %cst_29 : f32 to vector<16x64xf32>
    %97 = arith.maximumf %95, %96 : vector<16x64xf32>
    %98 = vector.extract_strided_slice %60 {offsets = [3, 0, 0], sizes = [1, 64, 54], strides = [1, 1, 1]} : vector<6x64x54xf32> to vector<1x64x54xf32>
    %99 = vector.shape_cast %98 : vector<1x64x54xf32> to vector<64x54xf32>
    %cst_30 = arith.constant dense<0.000000e+00> : vector<16x54xf32>
    %100 = tpu.matmul %97, %99, %cst_30 {dimension_numbers = #tpu.dot_dimension_numbers<[1], [0], [0], [1], [0, 0, 1, 1], [], []>} : vector<16x64xf32>, vector<64x54xf32>, vector<16x54xf32> -> vector<16x54xf32>
    %101 = arith.addf %91, %100 : vector<16x54xf32>
    %102 = vector.extract_strided_slice %59 {offsets = [4, 0, 0], sizes = [1, 1, 64], strides = [1, 1, 1]} : vector<6x1x64xf32> to vector<1x1x64xf32>
    %103 = vector.shape_cast %102 : vector<1x1x64xf32> to vector<1x64xf32>
    %104 = vector.broadcast %103 : vector<1x64xf32> to vector<16x64xf32>
    %105 = arith.addf %54, %104 : vector<16x64xf32>
    %cst_31 = arith.constant 0.000000e+00 : f32
    %106 = vector.broadcast %cst_31 : f32 to vector<16x64xf32>
    %107 = arith.maximumf %105, %106 : vector<16x64xf32>
    %108 = vector.extract_strided_slice %60 {offsets = [4, 0, 0], sizes = [1, 64, 54], strides = [1, 1, 1]} : vector<6x64x54xf32> to vector<1x64x54xf32>
    %109 = vector.shape_cast %108 : vector<1x64x54xf32> to vector<64x54xf32>
    %cst_32 = arith.constant dense<0.000000e+00> : vector<16x54xf32>
    %110 = tpu.matmul %107, %109, %cst_32 {dimension_numbers = #tpu.dot_dimension_numbers<[1], [0], [0], [1], [0, 0, 1, 1], [], []>} : vector<16x64xf32>, vector<64x54xf32>, vector<16x54xf32> -> vector<16x54xf32>
    %111 = arith.addf %101, %110 : vector<16x54xf32>
    %112 = vector.extract_strided_slice %59 {offsets = [5, 0, 0], sizes = [1, 1, 64], strides = [1, 1, 1]} : vector<6x1x64xf32> to vector<1x1x64xf32>
    %113 = vector.shape_cast %112 : vector<1x1x64xf32> to vector<1x64xf32>
    %114 = vector.broadcast %113 : vector<1x64xf32> to vector<16x64xf32>
    %115 = arith.addf %58, %114 : vector<16x64xf32>
    %cst_33 = arith.constant 0.000000e+00 : f32
    %116 = vector.broadcast %cst_33 : f32 to vector<16x64xf32>
    %117 = arith.maximumf %115, %116 : vector<16x64xf32>
    %118 = vector.extract_strided_slice %60 {offsets = [5, 0, 0], sizes = [1, 64, 54], strides = [1, 1, 1]} : vector<6x64x54xf32> to vector<1x64x54xf32>
    %119 = vector.shape_cast %118 : vector<1x64x54xf32> to vector<64x54xf32>
    %cst_34 = arith.constant dense<0.000000e+00> : vector<16x54xf32>
    %120 = tpu.matmul %117, %119, %cst_34 {dimension_numbers = #tpu.dot_dimension_numbers<[1], [0], [0], [1], [0, 0, 1, 1], [], []>} : vector<16x64xf32>, vector<64x54xf32>, vector<16x54xf32> -> vector<16x54xf32>
    %121 = arith.addf %111, %120 : vector<16x54xf32>
    %122 = vector.extract_strided_slice %121 {offsets = [0, 0], sizes = [16, 48], strides = [1, 1]} : vector<16x54xf32> to vector<16x48xf32>
    %123 = vector.extract_strided_slice %121 {offsets = [0, 48], sizes = [16, 3], strides = [1, 1]} : vector<16x54xf32> to vector<16x3xf32>
    %124 = tpu.transpose %123, [1, 0] : vector<16x3xf32> -> vector<3x16xf32>
    %125 = vector.extract_strided_slice %121 {offsets = [0, 51], sizes = [16, 3], strides = [1, 1]} : vector<16x54xf32> to vector<16x3xf32>
    %126 = tpu.transpose %125, [1, 0] : vector<16x3xf32> -> vector<3x16xf32>
    %127 = vector.shape_cast %126 : vector<3x16xf32> to vector<3x16x1xf32>
    %128 = vector.shape_cast %124 : vector<3x16xf32> to vector<3x1x16xf32>
    %129 = vector.broadcast %127 : vector<3x16x1xf32> to vector<3x16x16xf32>
    %130 = vector.broadcast %128 : vector<3x1x16xf32> to vector<3x16x16xf32>
    %131 = arith.addf %129, %130 : vector<3x16x16xf32>
    %cst_35 = arith.constant 0.000000e+00 : f32
    %132 = vector.broadcast %cst_35 : f32 to vector<3x16x16xf32>
    %133 = arith.cmpf oge, %131, %132 : vector<3x16x16xf32>
    %cst_36 = arith.constant 2.000000e-01 : f32
    %134 = vector.broadcast %cst_36 : f32 to vector<3x16x16xf32>
    %135 = arith.mulf %134, %131 : vector<3x16x16xf32>
    %136 = arith.select %133, %131, %135 : vector<3x16x16xi1>, vector<3x16x16xf32>
    %cst_37 = arith.constant -1.000000e+30 : f32
    %137 = vector.shape_cast %4 : vector<16x16xi1> to vector<1x16x16xi1>
    %138 = vector.broadcast %137 : vector<1x16x16xi1> to vector<3x16x16xi1>
    %139 = vector.broadcast %cst_37 : f32 to vector<3x16x16xf32>
    %140 = arith.select %138, %136, %139 : vector<3x16x16xi1>, vector<3x16x16xf32>
    %cst_38 = arith.constant dense<0xFF800000> : vector<3x16xf32>
    %141 = vector.multi_reduction <maximumf>, %140, %cst_38 [2] : vector<3x16x16xf32> to vector<3x16xf32>
    %142 = vector.shape_cast %141 : vector<3x16xf32> to vector<3x16x1xf32>
    %143 = vector.broadcast %142 : vector<3x16x1xf32> to vector<3x16x16xf32>
    %144 = arith.subf %140, %143 : vector<3x16x16xf32>
    %145 = math.exp %144 : vector<3x16x16xf32>
    %cst_39 = arith.constant dense<0.000000e+00> : vector<3x16xf32>
    %146 = vector.multi_reduction <add>, %145, %cst_39 [2] : vector<3x16x16xf32> to vector<3x16xf32>
    %147 = vector.shape_cast %146 : vector<3x16xf32> to vector<3x16x1xf32>
    %148 = vector.broadcast %147 : vector<3x16x1xf32> to vector<3x16x16xf32>
    %149 = arith.divf %145, %148 : vector<3x16x16xf32>
    %150 = vector.extract_strided_slice %149 {offsets = [0, 0, 0], sizes = [1, 16, 16], strides = [1, 1, 1]} : vector<3x16x16xf32> to vector<1x16x16xf32>
    %151 = vector.shape_cast %150 : vector<1x16x16xf32> to vector<16x16xf32>
    %152 = vector.extract_strided_slice %122 {offsets = [0, 0], sizes = [16, 16], strides = [1, 1]} : vector<16x48xf32> to vector<16x16xf32>
    %cst_40 = arith.constant dense<0.000000e+00> : vector<16x16xf32>
    %153 = tpu.matmul %151, %152, %cst_40 {dimension_numbers = #tpu.dot_dimension_numbers<[1], [0], [0], [1], [0, 0, 1, 1], [], []>} : vector<16x16xf32>, vector<16x16xf32>, vector<16x16xf32> -> vector<16x16xf32>
    %154 = vector.extract_strided_slice %149 {offsets = [1, 0, 0], sizes = [1, 16, 16], strides = [1, 1, 1]} : vector<3x16x16xf32> to vector<1x16x16xf32>
    %155 = vector.shape_cast %154 : vector<1x16x16xf32> to vector<16x16xf32>
    %156 = vector.extract_strided_slice %122 {offsets = [0, 16], sizes = [16, 16], strides = [1, 1]} : vector<16x48xf32> to vector<16x16xf32>
    %cst_41 = arith.constant dense<0.000000e+00> : vector<16x16xf32>
    %157 = tpu.matmul %155, %156, %cst_41 {dimension_numbers = #tpu.dot_dimension_numbers<[1], [0], [0], [1], [0, 0, 1, 1], [], []>} : vector<16x16xf32>, vector<16x16xf32>, vector<16x16xf32> -> vector<16x16xf32>
    %158 = vector.extract_strided_slice %149 {offsets = [2, 0, 0], sizes = [1, 16, 16], strides = [1, 1, 1]} : vector<3x16x16xf32> to vector<1x16x16xf32>
    %159 = vector.shape_cast %158 : vector<1x16x16xf32> to vector<16x16xf32>
    %160 = vector.extract_strided_slice %122 {offsets = [0, 32], sizes = [16, 16], strides = [1, 1]} : vector<16x48xf32> to vector<16x16xf32>
    %cst_42 = arith.constant dense<0.000000e+00> : vector<16x16xf32>
    %161 = tpu.matmul %159, %160, %cst_42 {dimension_numbers = #tpu.dot_dimension_numbers<[1], [0], [0], [1], [0, 0, 1, 1], [], []>} : vector<16x16xf32>, vector<16x16xf32>, vector<16x16xf32> -> vector<16x16xf32>
    %162 = arith.addf %153, %157 : vector<16x16xf32>
    %163 = arith.addf %162, %161 : vector<16x16xf32>
    %cst_43 = arith.constant 0.333333343 : f32
    %164 = vector.broadcast %cst_43 : f32 to vector<16x16xf32>
    %165 = arith.mulf %163, %164 : vector<16x16xf32>
    %c0_44 = arith.constant 0 : index
    %c0_45 = arith.constant 0 : index
    %166 = vector.load %arg6[%c0_44, %c0_45] : memref<1x16xf32, #tpu.memory_space<vmem>>, vector<1x16xf32>
    %167 = vector.broadcast %166 : vector<1x16xf32> to vector<16x16xf32>
    %168 = arith.addf %165, %167 : vector<16x16xf32>
    %c0_46 = arith.constant 0 : index
    %c0_47 = arith.constant 0 : index
    %169 = vector.load %arg7[%c0_46, %c0_47] : memref<2x16xf32, #tpu.memory_space<vmem>>, vector<2x16xf32>
    %cst_48 = arith.constant dense<0.000000e+00> : vector<2x16xf32>
    %170 = tpu.matmul %169, %168, %cst_48 {dimension_numbers = #tpu.dot_dimension_numbers<[1], [0], [0], [1], [0, 0, 1, 1], [], []>} : vector<2x16xf32>, vector<16x16xf32>, vector<2x16xf32> -> vector<2x16xf32>
    %c0_49 = arith.constant 0 : index
    %c0_50 = arith.constant 0 : index
    %171 = vector.load %arg8[%c0_49, %c0_50] : memref<16x3xf32, #tpu.memory_space<vmem>>, vector<16x3xf32>
    %cst_51 = arith.constant dense<0.000000e+00> : vector<2x3xf32>
    %172 = tpu.matmul %170, %171, %cst_51 {dimension_numbers = #tpu.dot_dimension_numbers<[1], [0], [0], [1], [0, 0, 1, 1], [], []>} : vector<2x16xf32>, vector<16x3xf32>, vector<2x3xf32> -> vector<2x3xf32>
    %c0_52 = arith.constant 0 : index
    %c0_53 = arith.constant 0 : index
    %173 = vector.load %arg9[%c0_52, %c0_53] : memref<1x3xf32, #tpu.memory_space<vmem>>, vector<1x3xf32>
    %174 = vector.broadcast %173 : vector<1x3xf32> to vector<2x3xf32>
    %175 = arith.addf %172, %174 : vector<2x3xf32>
    %c0_54 = arith.constant 0 : index
    %c0_55 = arith.constant 0 : index
    %176 = vector.load %arg10[%c0_54, %c0_55] : memref<2x3xf32, #tpu.memory_space<vmem>>, vector<2x3xf32>
    tpu.vector_store %arg10[%c0_54, %c0_55], %175 {strides = array<i32>} : memref<2x3xf32, #tpu.memory_space<vmem>>, vector<2x3xf32>,
    return
  }
  func.func @transform_0(%arg0: i32) -> (i32, i32) {
    %c0_i32 = arith.constant 0 : i32
    %c0_i32_0 = arith.constant 0 : i32
    %c0_i32_1 = arith.constant 0 : i32
    return %c0_i32, %c0_i32_0 : i32, i32
  }
  func.func @transform_1(%arg0: i32) -> (i32, i32) {
    %c0_i32 = arith.constant 0 : i32
    %c0_i32_0 = arith.constant 0 : i32
    %c0_i32_1 = arith.constant 0 : i32
    return %c0_i32, %c0_i32_0 : i32, i32
  }
  func.func @transform_2(%arg0: i32) -> (i32, i32) {
    %c0_i32 = arith.constant 0 : i32
    %c0_i32_0 = arith.constant 0 : i32
    %c0_i32_1 = arith.constant 0 : i32
    return %c0_i32, %c0_i32_0 : i32, i32
  }
  func.func @transform_3(%arg0: i32) -> (i32, i32, i32) {
    %c0_i32 = arith.constant 0 : i32
    %c0_i32_0 = arith.constant 0 : i32
    %c0_i32_1 = arith.constant 0 : i32
    %c0_i32_2 = arith.constant 0 : i32
    return %c0_i32, %c0_i32_0, %c0_i32_1 : i32, i32, i32
  }
  func.func @transform_4(%arg0: i32) -> (i32, i32, i32) {
    %c0_i32 = arith.constant 0 : i32
    %c0_i32_0 = arith.constant 0 : i32
    %c0_i32_1 = arith.constant 0 : i32
    %c0_i32_2 = arith.constant 0 : i32
    return %c0_i32, %c0_i32_0, %c0_i32_1 : i32, i32, i32
  }
  func.func @transform_5(%arg0: i32) -> (i32, i32) {
    %c0_i32 = arith.constant 0 : i32
    %c0_i32_0 = arith.constant 0 : i32
    %c0_i32_1 = arith.constant 0 : i32
    return %c0_i32, %c0_i32_0 : i32, i32
  }
  func.func @transform_6(%arg0: i32) -> (i32, i32) {
    %c0_i32 = arith.constant 0 : i32
    %c0_i32_0 = arith.constant 0 : i32
    %c0_i32_1 = arith.constant 0 : i32
    return %c0_i32, %c0_i32_0 : i32, i32
  }
  func.func @transform_7(%arg0: i32) -> (i32, i32) {
    %c0_i32 = arith.constant 0 : i32
    %c0_i32_0 = arith.constant 0 : i32
    %c0_i32_1 = arith.constant 0 : i32
    return %c0_i32, %c0_i32_0 : i32, i32
  }
  func.func @transform_8(%arg0: i32) -> (i32, i32) {
    %c0_i32 = arith.constant 0 : i32
    %c0_i32_0 = arith.constant 0 : i32
    %c0_i32_1 = arith.constant 0 : i32
    return %c0_i32, %c0_i32_0 : i32, i32
  }
  func.func @transform_9(%arg0: i32) -> (i32, i32) {
    %c0_i32 = arith.constant 0 : i32
    %c0_i32_0 = arith.constant 0 : i32
    %c0_i32_1 = arith.constant 0 : i32
    return %c0_i32, %c0_i32_0 : i32, i32
  }
}

</mosaic_0001>

<bundles_post_ra>
// kernel: gat_model_forward.1
= control target key start
LH: loop header
LB: loop body
LE: loop exit
PB: predicated region body
PF: predicated region fallthrough
CT: control target
= control target key end

     0   :  { %vm45_vm0 = vcmask 64512   ;;  %v3037_v3 = vmov 0.0   ;;  %s3603_s0 = inlined_call_operand.vmem [shape: f32[16,8], index: 0, kind: input, shape index: {}]   ;;  %s3604_s1 = inlined_call_operand.vmem [shape: s8[16,16], index: 1, kind: input, shape index: {}]   ;;  %s3605_s2 = inlined_call_operand.vmem [shape: f32[8,396], index: 2, kind: input, shape index: {}]   ;;  %s3606_s3 = inlined_call_operand.vmem [shape: f32[6,1,64], index: 3, kind: input, shape index: {}]   ;;  %s3607_s4 = inlined_call_operand.vmem [shape: f32[6,64,54], index: 4, kind: input, shape index: {}]   ;;  %s3608_s5 = inlined_call_operand.vmem [shape: f32[1,16], index: 5, kind: input, shape index: {}]   ;;  %s3609_s6 = inlined_call_operand.vmem [shape: f32[2,16], index: 6, kind: input, shape index: {}]   ;;  %s3610_s7 = inlined_call_operand.vmem [shape: f32[16,3], index: 7, kind: input, shape index: {}]   ;;  %s3611_s8 = inlined_call_operand.vmem [shape: f32[1,3], index: 8, kind: input, shape index: {}]   ;;  %s3612_s9 = inlined_call_operand.hbm [shape: f32[2,3], index: 9, kind: output, shape index: {}]  }
   0x1   :  { %v44_v0 = vld [vmem:[%s3605_s2 + $0x18] sm:$0xff]  ;;  %v43_v1 = vld [vmem:[%s3605_s2 + $0x10] sm:$0xff]  ;;  %v33_v2 = vld [vmem:[%s3603_s0] sm:$0xff]  ;;  %193 = vmatprep.mubr.f32.mxu1 %v3037_v3 }
   0x2   :  { %129 = vmatprep.subr.mxu1 %v44_v0 }
   0x3   :  { %14 = vsyncpa [#allocation3], 0  ;;  %130 = vmatpush1.msra.mxu1 %v43_v1  ;;  %116 = vmatprep.mubr.f32.mxu0 %v3037_v3  ;;  %v34_v4 = vld [vmem:[%s3603_s0 + $0x8] sm:$0xff]  ;;  %s3038_s17 = smov 122   ;;  %v278_v13 = vlaneseq  ;;  %v41_v17 = vld [vmem:[%s3605_s2] sm:$0xff]  ;;  %vm486_vm6 = vcmask 130048  }
   0x4   :  { %2414 = vmatmul.mubr.msk.f32.vlgmr.msra.gmra.mrb[0].mxu1 %vm45_vm0, %v33_v2  ;;  %v42_v16 = vld [vmem:[%s3605_s2 + $0x8] sm:$0xff]  ;;  %v3039_v22 = vmov 1966171168   ;;  %v2457_v35 = vld [vmem:[%s3604_s1] sm:$0xf]   ;;  %s3040_s1 = smov 64  }
   0x5   :  { %199 = vmatprep.mubr.f32.mxu1 %v3037_v3  ;;  %v3125_v14 = vshrl.u32 %v278_v13, 7  ;;  %52 = vmatprep.subr.mxu0 %v42_v16  ;;  %v347_v23 = vunpack.c.l.s4 %v3039_v22  ;;  %v2458_v39 = vunpack.c.0.s8 %v2457_v35  ;;  %v2459_v40 = vunpack.c.1.s8 %v2457_v35  ;;  %s3041_s12 = smov 80   ;;  %s3042_s13 = smov 77  }
   0x6   :  { %53 = vmatpush1.msra.mxu0 %v41_v17  ;;  %s3044_s14 = smov 96   ;;  %s3047_s21 = smov [#allocation2]  }
   0x7   :  { %v291_v15 = vsub.s32 1, %v3125_v14  ;;  %2412 = vmatmul.mubr.msk.f32.vlgmr.msra.gmra.mrb[0].mxu0 %vm45_vm0, %v33_v2  ;;  %v3138_v19 = vsub.s32 0, %v3125_v14  ;;  %v348_v24 = vunpack.c.0.s8 %v347_v23  ;;  %vm3167_vm4 = vcmp.gt.s32.totalorder %v2458_v39, 0  ;;  %s2404_s22 = sshll.u32 %s3047_s21, 4  ;;  %s2405_s22 = int_to_ptr.vmem [resolvable:$true] %s2404_s22 }
   0x8   :  { %2415 = vmatmul.mubr.msk.f32.gmra.mrb[2].mxu1 %vm45_vm0, %v34_v4  ;;  %122 = vmatprep.mubr.f32.mxu0 %v3037_v3  ;;  %vm3171_vm5 = vcmp.gt.s32.totalorder %v2459_v40, 0  ;;  %v302_v39 = vsub.s32 2, %v3125_v14  ;;  %p3018_p1 = scmp.lt.s32.totalorder %s2405_s22, %s2405_s22 }
   0x9   :  { %v3148_v27 = vsub.s32 %v348_v24, %v3125_v14 }
   0xb   :  { %2413 = vmatmul.mubr.msk.f32.gmra.mrb[2].mxu0 %vm45_vm0, %v34_v4  ;;  %vm859_vm0 = vcmask 523264  }
  0xd7   :  { %v3115_v5 = vpop.f32.mrb[0].mxu1 }
  0xd8   :  { %v197_v6 = vpop.f32.mrb[1].mxu1 }
  0xd9   :  { %240 = vrot.lane.b32.xlu0 %v197_v6, %s3038_s17 }
  0xda   :  { %v118_v62 = vpop.f32.mrb[0].mxu0 }
  0xdb   :  { %v3117_v7 = vpop.f32.mrb[2].mxu1  ;;  %v3187_v63 = vpop.f32.mrb[1].mxu0 }
  0xdc   :  { %v2926_v8 = vpack.i.bf16 %v3117_v7, %v3115_v5  ;;  %v3123_v9 = vpack.c.bf16 %v3117_v7, %v3115_v5  ;;  %v203_v10 = vpop.f32.mrb[3].mxu1  ;;  %v2416_v5 = vld [vmem:[%s3606_s3] ss:$0 sm:$0xff] }
  0xdd   :  { %242 = vrot.lane.b32.xlu0 %v203_v10, %s3038_s17 }
  0xde   :  { %v124_v0 = vpop.f32.mrb[2].mxu0 }
  0xdf   :  { %v2916_v1 = vpack.i.bf16 %v124_v0, %v118_v62  ;;  %v2753_v2 = vpack.c.bf16 %v124_v0, %v118_v62  ;;  %v3189_v4 = vpop.f32.mrb[3].mxu0 }
  0xe1   :  { %2754 = vmatprep.subr.bf16.mxu0 %v2753_v2 }
  0xe2   :  { %2756 = vmatpush3.bf16.msra.mxu0 %v2753_v2 }
 0x14b   :  { %v241_v11 = vpop.permute.xlu0 %240 }
 0x14c   :  { %246 = vxpose.xlu1.b32.start [1/2] (short) (narrow) %v241_v11, 8 }
 0x14f   :  { %v243_v12 = vpop.permute.xlu0 %242 }
 0x150   :  { %247 = vxpose.xlu1.b32.end [2/2] (short) (narrow) %v243_v12, 8 }
 0x1cc   :  { %v3134_v18 = vpop.trf.xlu1 }
 0x1cd   :  { %v292_v20 = vrot.slane %v3134_v18, %v291_v15  ;;  %v281_v21 = vrot.slane %v3134_v18, %v3138_v19  ;;  %v303_v40 = vrot.slane %v3134_v18, %v302_v39 }
 0x1cf   :  { %298 = vbcast.lane.b32.xlu1 %v292_v20, 264  ;;  %294 = vbcast.lane.b32.xlu0 %v292_v20, 256 }
 0x1d3   :  { %283 = vbcast.lane.b32.xlu1 %v281_v21, 256 }
 0x1d7   :  { %287 = vbcast.lane.b32.xlu1 %v281_v21, 264 }
 0x1ed   :  { %206 = vxpose.xlu0.b32.start [1/2] (short) (narrow) %v197_v6, 8  ;;  %v2921_v6 = vpack.i.bf16 %v3189_v4, %v3187_v63 }
 0x1f1   :  { %207 = vxpose.xlu0.b32.end [2/2] (short) (narrow) %v203_v10, 8  ;;  %v3195_v10 = vpack.c.bf16 %v3189_v4, %v3187_v63  ;;  %v628_v63 = vld [vmem:[%s3607_s4 + $0x18] sm:$0xff] }
 0x241   :  { %v299_v25 = vpop.permute.xlu1 %298  ;;  %v295_v26 = vpop.permute.xlu0 %294 }
 0x245   :  { %v284_v30 = vpop.permute.xlu1 %283 }
 0x249   :  { %v288_v38 = vpop.permute.xlu1 %287 }
 0x26d   :  { %v3150_v28 = vpop.trf.xlu0 }
 0x26e   :  { %v352_v29 = vrot.slane %v3150_v28, %v3148_v27 }
 0x270   :  { %v360_v31 = vcombine.high %v352_v29, %v352_v29  ;;  %v3155_v32 = vrot.slane %v352_v29, %v3148_v27 }
 0x272   :  { %v3158_v33 = vrot.slane %v360_v31, %v3148_v27  ;;  %v395_v34 = vrot.slane %v3155_v32, %v3138_v19 }
 0x274   :  { %v399_v36 = vrot.slane %v3158_v33, %v3138_v19  ;;  %v422_v37 = vadd.f32 %v395_v34, %v284_v30  ;;  %v423_v44 = vadd.f32 %v395_v34, %v288_v38 }
 0x276   :  { %v424_v41 = vadd.f32 %v399_v36, %v295_v26  ;;  %v425_v42 = vadd.f32 %v399_v36, %v299_v25  ;;  %v446_v43 = vmul.f32 0.2, %v422_v37  ;;  %vm434_vm1 = vcmp.ge.f32.partialorder %v422_v37, 0.0 }
 0x277   :  { %v447_v52 = vmul.f32 0.2, %v423_v44  ;;  %vm435_vm7 = vcmp.ge.f32.partialorder %v423_v44, 0.0 }
 0x278   :  { %vm436_vm2 = vcmp.ge.f32.partialorder %v424_v41, 0.0  ;;  %v448_v45 = vmul.f32 0.2, %v424_v41  ;;  %vm437_vm3 = vcmp.ge.f32.partialorder %v425_v42, 0.0  ;;  %v449_v46 = vmul.f32 0.2, %v425_v42 }
 0x279   :  { %v458_v51 = vsel %vm434_vm1, %v422_v37, %v446_v43  ;;  %v459_v58 = vsel %vm435_vm7, %v423_v44, %v447_v52  ;;  %v324_v43 = vsub.s32 4, %v3125_v14  ;;  %v345_v52 = vcombine.high %v3150_v28, %v3150_v28 }
 0x27a   :  { %v460_v49 = vsel %vm436_vm2, %v424_v41, %v448_v45  ;;  %v461_v50 = vsel %vm437_vm3, %v425_v42, %v449_v46  ;;  %v474_v57 = vsel %vm3167_vm4, %v458_v51, -1e+30  ;;  %v475_v60 = vsel %vm3171_vm5, %v459_v58, -1e+30 }
 0x27b   :  { %v476_v53 = vsel %vm3167_vm4, %v460_v49, -1e+30  ;;  %v477_v54 = vsel %vm3171_vm5, %v461_v50, -1e+30  ;;  %v487_v59 = vsel %vm486_vm6, %v474_v57, -inf  ;;  %v490_v61 = vsel %vm486_vm6, %v475_v60, -inf }
 0x27c   :  { %v493_v55 = vsel %vm486_vm6, %v476_v53, -inf  ;;  %v496_v56 = vsel %vm486_vm6, %v477_v54, -inf  ;;  %v313_v41 = vsub.s32 3, %v3125_v14  ;;  %v325_v44 = vrot.slane %v3134_v18, %v324_v43 }
 0x27d   :  { %494 = vmax.xlane.f32.xlu0 %v493_v55  ;;  %497 = vmax.xlane.f32.xlu1 %v496_v56  ;;  %v335_v45 = vsub.s32 5, %v3125_v14  ;;  %v359_v56 = vrot.slane %v345_v52, %v3148_v27  ;;  %v391_v58 = vcombine.high %v3158_v33, %v3158_v33 }
 0x27e   :  { %v314_v42 = vrot.slane %v3134_v18, %v313_v41 }
 0x27f   :  { %v336_v46 = vrot.slane %v3134_v18, %v335_v45  ;;  %v361_v2 = vcombine.high %v359_v56, %v359_v56  ;;  %v375_v33 = vrot.slane %v359_v56, %v3148_v27 }
 0x281   :  { %488 = vmax.xlane.f32.xlu1 %v487_v59 }
 0x285   :  { %491 = vmax.xlane.f32.xlu1 %v490_v61 }
 0x30a   :  { %v495_v11 = vpop.xlane.xlu0 %494  ;;  %v498_v12 = vpop.xlane.xlu1 %497 }
 0x30b   :  { %v525_v13 = vsub.f32 %v476_v53, %v495_v11  ;;  %v526_v16 = vsub.f32 %v477_v54, %v498_v12  ;;  %v390_v53 = vcombine.high %v3155_v32, %v3155_v32 }
 0x30d   :  { %v539_v17 = vmul.f32 1.442695, %v525_v13  ;;  %v541_v20 = vmul.f32 1.442695, %v526_v16  ;;  %v403_v61 = vrot.slane %v390_v53, %v3138_v19  ;;  %v407_v13 = vrot.slane %v391_v58, %v3138_v19 }
 0x30e   :  { %v489_v21 = vpop.xlane.xlu1 %488 }
 0x30f   :  { %2941 = vpow2.f32 %v539_v17  ;;  %v523_v22 = vsub.f32 %v474_v57, %v489_v21 }
 0x310   :  { %2943 = vpow2.f32 %v541_v20 }
 0x311   :  { %v535_v23 = vmul.f32 1.442695, %v523_v22 }
 0x312   :  { %v492_v24 = vpop.xlane.xlu1 %491 }
 0x313   :  { %2945 = vpow2.f32 %v535_v23  ;;  %v524_v25 = vsub.f32 %v475_v60, %v492_v24 }
 0x315   :  { %v537_v26 = vmul.f32 1.442695, %v524_v25 }
 0x317   :  { %2947 = vpow2.f32 %v537_v26 }
 0x319   :  { %v2942_v29 = vpop.eup %2941 }
 0x31a   :  { %v2944_v30 = vpop.eup %2943  ;;  %v565_v31 = vsel %vm486_vm6, %v2942_v29, 0.0 }
 0x31b   :  { %566 = vadd.xlane.f32.xlu1 %v565_v31  ;;  %v568_v34 = vsel %vm486_vm6, %v2944_v30, 0.0 }
 0x31c   :  { %569 = vadd.xlane.f32.xlu0 %v568_v34 }
 0x31d   :  { %v2946_v35 = vpop.eup %2945 }
 0x31e   :  { %v559_v36 = vsel %vm486_vm6, %v2946_v35, 0.0 }
 0x31f   :  { %560 = vadd.xlane.f32.xlu1 %v559_v36 }
 0x321   :  { %v3200_v37 = vpop.eup %2947 }
 0x322   :  { %v562_v38 = vsel %vm486_vm6, %v3200_v37, 0.0 }
 0x323   :  { %563 = vadd.xlane.f32.xlu0 %v562_v38 }
 0x330   :  { %2917 = vrot.lane.b32.xlu1 %v2916_v1, %s3040_s1 }
 0x334   :  { %309 = vbcast.lane.b32.xlu1 %v303_v40, 264 }
 0x338   :  { %316 = vbcast.lane.b32.xlu1 %v314_v42, 256 }
 0x339   :  { %305 = vbcast.lane.b32.xlu0 %v303_v40, 256 }
 0x33c   :  { %327 = vbcast.lane.b32.xlu1 %v325_v44, 256 }
 0x33d   :  { %320 = vbcast.lane.b32.xlu0 %v314_v42, 264 }
 0x340   :  { %338 = vbcast.lane.b32.xlu1 %v336_v46, 256 }
 0x341   :  { %331 = vbcast.lane.b32.xlu0 %v325_v44, 264 }
 0x345   :  { %342 = vbcast.lane.b32.xlu0 %v336_v46, 264 }
 0x3a8   :  { %v567_v49 = vpop.xlane.xlu1 %566 }
 0x3a9   :  { %v570_v50 = vpop.xlane.xlu0 %569  ;;  %2949 = vrcp.f32 %v567_v49 }
 0x3aa   :  { %2951 = vrcp.f32 %v570_v50 }
 0x3ac   :  { %v561_v51 = vpop.xlane.xlu1 %560 }
 0x3ad   :  { %2953 = vrcp.f32 %v561_v51 }
 0x3b0   :  { %v564_v54 = vpop.xlane.xlu0 %563  ;;  %v2918_v55 = vpop.permute.xlu1 %2917 }
 0x3b1   :  { %2955 = vrcp.f32 %v564_v54  ;;  %v2920_v18 = vunpack.i.h.bf16 %v2918_v55  ;;  %v2919_v57 = vunpack.i.l.bf16 %v2918_v55 }
 0x3b3   :  { %v2950_v59 = vpop.eup %2949  ;;  %v2757_v60 = vpack.c.bf16 %v2920_v18, %v2919_v57 }
 0x3b4   :  { %v2952_v62 = vpop.eup %2951  ;;  %v306_v28 = vpop.permute.xlu0 %305  ;;  %v600_v1 = vmul.f32 %v2950_v59, %v2942_v29 }
 0x3b5   :  { %v310_v0 = vpop.permute.xlu1 %309  ;;  %v426_v32 = vadd.f32 %v403_v61, %v306_v28  ;;  %2758 = vmatprep.subr.bf16.mxu1 %v2757_v60  ;;  %v602_v12 = vmul.f32 %v2952_v62, %v2944_v30  ;;  %v411_v30 = vrot.slane %v375_v33, %v3138_v19 }
 0x3b6   :  { %v427_v11 = vadd.f32 %v403_v61, %v310_v0  ;;  %2760 = vmatpush3.bf16.msra.mxu1 %v2757_v60  ;;  %2573 = vmatprep.mubr.msk.f32.mxu1 %vm486_vm6, %v600_v1 }
 0x3b7   :  { %v2954_v16 = vpop.eup %2953  ;;  %v450_v17 = vmul.f32 0.2, %v426_v32  ;;  %vm438_vm8 = vcmp.ge.f32.partialorder %v426_v32, 0.0 }
 0x3b8   :  { %v451_v20 = vmul.f32 0.2, %v427_v11  ;;  %vm439_vm9 = vcmp.ge.f32.partialorder %v427_v11, 0.0  ;;  %v321_v21 = vpop.permute.xlu0 %320  ;;  %v596_v23 = vmul.f32 %v2954_v16, %v2946_v35  ;;  %v389_v35 = vrot.slane %v361_v2, %v3148_v27 }
 0x3b9   :  { %v317_v22 = vpop.permute.xlu1 %316  ;;  %v429_v24 = vadd.f32 %v407_v13, %v321_v21  ;;  %2574 = vmatmul.mubr.msk.f32.vlgmr.msra.gmra.mrb[4].mxu1 %vm486_vm6, %v602_v12  ;;  %v462_v26 = vsel %vm438_vm8, %v426_v32, %v450_v17  ;;  %v633_v21 = vld [vmem:[%s3607_s4 + $0x40] sm:$0xff] }
 0x3ba   :  { %v428_v25 = vadd.f32 %v407_v13, %v317_v22  ;;  %v463_v29 = vsel %vm439_vm9, %v427_v11, %v451_v20  ;;  %2566 = vmatprep.mubr.msk.f32.mxu0 %vm486_vm6, %v596_v23  ;;  %v3231_v31 = vsel %vm3167_vm4, %v462_v26, -1e+30  ;;  %v415_v52 = vrot.slane %v389_v35, %v3138_v19  ;;  %v634_v22 = vld [vmem:[%s3607_s4 + $0x48] sm:$0xff]  ;;  %v635_v23 = vld [vmem:[%s3607_s4 + $0x50] sm:$0xff] }
 0x3bb   :  { %v3235_v34 = vsel %vm3171_vm5, %v463_v29, -1e+30  ;;  %v2956_v36 = vpop.eup %2955  ;;  %v453_v38 = vmul.f32 0.2, %v429_v24  ;;  %v499_v41 = vsel %vm486_vm6, %v3231_v31, -inf  ;;  %vm441_vm10 = vcmp.ge.f32.partialorder %v429_v24, 0.0 }
 0x3bc   :  { %v452_v40 = vmul.f32 0.2, %v428_v25  ;;  %v502_v42 = vsel %vm486_vm6, %v3235_v34, -inf  ;;  %v598_v43 = vmul.f32 %v2956_v36, %v3200_v37  ;;  %v332_v44 = vpop.permute.xlu0 %331  ;;  %500 = vmax.xlane.f32.xlu1 %v499_v41  ;;  %vm440_vm11 = vcmp.ge.f32.partialorder %v428_v25, 0.0  ;;  %v637_v29 = vld [vmem:[%s3607_s4 + $0x60] sm:$0xff]  ;;  %v639_v36 = vld [vmem:[%s3607_s4 + $0x70] sm:$0xff] }
 0x3bd   :  { %503 = vmax.xlane.f32.xlu0 %v502_v42  ;;  %v328_v45 = vpop.permute.xlu1 %327  ;;  %v431_v46 = vadd.f32 %v411_v30, %v332_v44  ;;  %v465_v50 = vsel %vm441_vm10, %v429_v24, %v453_v38  ;;  %v2761_v24 = vpack.c.bf16 %v634_v22, %v633_v21  ;;  %v640_v38 = vld [vmem:[%s3607_s4 + $0x78] sm:$0xff]  ;;  %v625_v41 = vld [vmem:[%s3607_s4] sm:$0xff]  ;;  %v626_v42 = vld [vmem:[%s3607_s4 + $0x8] sm:$0xff] }
 0x3be   :  { %v430_v49 = vadd.f32 %v411_v30, %v328_v45  ;;  %v464_v51 = vsel %vm440_vm11, %v428_v25, %v452_v40  ;;  %2567 = vmatmul.mubr.msk.f32.vlgmr.msra.gmra.mrb[4].mxu0 %vm486_vm6, %v598_v43  ;;  %v3247_v53 = vsel %vm3171_vm5, %v465_v50, -1e+30  ;;  %v636_v25 = vld [vmem:[%s3607_s4 + $0x58] sm:$0xff]  ;;  %v638_v30 = vld [vmem:[%s3607_s4 + $0x68] sm:$0xff]  ;;  %v2773_v40 = vpack.c.bf16 %v640_v38, %v639_v36 }
 0x3bf   :  { %v3251_v37 = vsel %vm3167_vm4, %v464_v51, -1e+30  ;;  %v455_v54 = vmul.f32 0.2, %v431_v46  ;;  %v508_v56 = vsel %vm486_vm6, %v3247_v53, -inf  ;;  %vm443_vm12 = vcmp.ge.f32.partialorder %v431_v46, 0.0  ;;  %2762 = vmatprep.subr.bf16.mxu1 %v2761_v24 }
 0x3c0   :  { %v454_v55 = vmul.f32 0.2, %v430_v49  ;;  %v505_v18 = vsel %vm486_vm6, %v3251_v37, -inf  ;;  %v343_v57 = vpop.permute.xlu0 %342  ;;  %509 = vmax.xlane.f32.xlu1 %v508_v56  ;;  %vm442_vm13 = vcmp.ge.f32.partialorder %v430_v49, 0.0  ;;  %v2765_v26 = vpack.c.bf16 %v636_v25, %v635_v23  ;;  %2764 = vmatpush3.bf16.msra.mxu1 %v2761_v24 }
 0x3c1   :  { %506 = vmax.xlane.f32.xlu0 %v505_v18  ;;  %v339_v58 = vpop.permute.xlu1 %338  ;;  %v433_v59 = vadd.f32 %v415_v52, %v343_v57  ;;  %v467_v61 = vsel %vm443_vm12, %v431_v46, %v455_v54  ;;  %v2769_v35 = vpack.c.bf16 %v638_v30, %v637_v29  ;;  %v3302_v43 = vpack.c.bf16 %v626_v42, %v625_v41  ;;  %v2419_v30 = vld [vmem:[%s3606_s3 + $0x1] ss:$0 sm:$0xff]  ;;  %v627_v41 = vld [vmem:[%s3607_s4 + $0x10] sm:$0xff] }
 0x3c2   :  { %v432_v60 = vadd.f32 %v415_v52, %v339_v58  ;;  %v466_v62 = vsel %vm442_vm13, %v430_v49, %v454_v55  ;;  %v3259_v28 = vsel %vm3171_vm5, %v467_v61, -1e+30  ;;  %2766 = vmatprep.subr.bf16.mxu1 %v2765_v26 }
 0x3c3   :  { %v482_v0 = vsel %vm3167_vm4, %v466_v62, -1e+30  ;;  %v457_v1 = vmul.f32 0.2, %v433_v59  ;;  %v514_v32 = vsel %vm486_vm6, %v3259_v28, -inf  ;;  %vm445_vm14 = vcmp.ge.f32.partialorder %v433_v59, 0.0 }
 0x3c4   :  { %v456_v2 = vmul.f32 0.2, %v432_v60  ;;  %v511_v11 = vsel %vm486_vm6, %v482_v0, -inf  ;;  %515 = vmax.xlane.f32.xlu1 %v514_v32  ;;  %vm444_vm15 = vcmp.ge.f32.partialorder %v432_v60, 0.0  ;;  %2768 = vmatpush3.bf16.msra.mxu1 %v2765_v26 }
 0x3c5   :  { %512 = vmax.xlane.f32.xlu0 %v511_v11  ;;  %v469_v12 = vsel %vm445_vm14, %v433_v59, %v457_v1  ;;  %2770 = vmatprep.subr.bf16.mxu1 %v2769_v35 }
 0x3c6   :  { %v468_v13 = vsel %vm444_vm15, %v432_v60, %v456_v2  ;;  %v485_v33 = vsel %vm3171_vm5, %v469_v12, -1e+30 }
 0x3c7   :  { %v484_v16 = vsel %vm3167_vm4, %v468_v13, -1e+30  ;;  %v520_v17 = vsel %vm486_vm6, %v485_v33, -inf }
 0x3c8   :  { %v517_v20 = vsel %vm486_vm6, %v484_v16, -inf  ;;  %521 = vmax.xlane.f32.xlu1 %v520_v17  ;;  %2772 = vmatpush3.bf16.msra.mxu1 %v2769_v35 }
 0x3c9   :  { %518 = vmax.xlane.f32.xlu0 %v517_v20  ;;  %2774 = vmatprep.subr.bf16.mxu1 %v2773_v40 }
 0x3cc   :  { %2776 = vmatpush3.bf16.msra.mxu1 %v2773_v40 }
 0x3cd   :  { %2778 = vmatprep.subr.bf16.mxu1 %v3302_v43 }
 0x449   :  { %v501_v45 = vpop.xlane.xlu1 %500 }
 0x44a   :  { %v504_v44 = vpop.xlane.xlu0 %503  ;;  %v527_v49 = vsub.f32 %v3231_v31, %v501_v45  ;;  %v630_v45 = vld [vmem:[%s3607_s4 + $0x28] sm:$0xff] }
 0x44b   :  { %v528_v46 = vsub.f32 %v3235_v34, %v504_v44  ;;  %v629_v44 = vld [vmem:[%s3607_s4 + $0x20] sm:$0xff] }
 0x44c   :  { %v543_v51 = vmul.f32 1.442695, %v527_v49 }
 0x44d   :  { %v545_v50 = vmul.f32 1.442695, %v528_v46  ;;  %v510_v54 = vpop.xlane.xlu1 %509 }
 0x44e   :  { %v507_v52 = vpop.xlane.xlu0 %506  ;;  %v530_v56 = vsub.f32 %v3247_v53, %v510_v54 }
 0x44f   :  { %2957 = vpow2.f32 %v545_v50  ;;  %v529_v55 = vsub.f32 %v3251_v37, %v507_v52  ;;  %v2785_v50 = vpack.c.bf16 %v630_v45, %v629_v44  ;;  %v632_v52 = vld [vmem:[%s3607_s4 + $0x38] sm:$0xff] }
 0x450   :  { %2959 = vpow2.f32 %v543_v51  ;;  %v549_v57 = vmul.f32 1.442695, %v530_v56  ;;  %v631_v51 = vld [vmem:[%s3607_s4 + $0x30] sm:$0xff] }
 0x451   :  { %v547_v18 = vmul.f32 1.442695, %v529_v55  ;;  %v516_v59 = vpop.xlane.xlu1 %515  ;;  %v2789_v54 = vpack.c.bf16 %v632_v52, %v631_v51 }
 0x452   :  { %v513_v58 = vpop.xlane.xlu0 %512  ;;  %v532_v34 = vsub.f32 %v3259_v28, %v516_v59 }
 0x453   :  { %2961 = vpow2.f32 %v547_v18  ;;  %v531_v60 = vsub.f32 %v482_v0, %v513_v58 }
 0x454   :  { %2963 = vpow2.f32 %v549_v57  ;;  %v553_v61 = vmul.f32 1.442695, %v532_v34 }
 0x455   :  { %v551_v31 = vmul.f32 1.442695, %v531_v60  ;;  %v522_v1 = vpop.xlane.xlu1 %521 }
 0x456   :  { %v519_v62 = vpop.xlane.xlu0 %518  ;;  %v534_v32 = vsub.f32 %v485_v33, %v522_v1 }
 0x457   :  { %2965 = vpow2.f32 %v551_v31  ;;  %v533_v2 = vsub.f32 %v484_v16, %v519_v62 }
 0x458   :  { %2967 = vpow2.f32 %v553_v61  ;;  %v557_v12 = vmul.f32 1.442695, %v534_v32 }
 0x459   :  { %v3310_v37 = vpop.eup %2957  ;;  %v555_v53 = vmul.f32 1.442695, %v533_v2 }
 0x45a   :  { %v3312_v11 = vpop.eup %2959  ;;  %v574_v0 = vsel %vm486_vm6, %v3310_v37, 0.0 }
 0x45b   :  { %2969 = vpow2.f32 %v555_v53  ;;  %575 = vadd.xlane.f32.xlu1 %v574_v0  ;;  %v571_v28 = vsel %vm486_vm6, %v3312_v11, 0.0  ;;  %v641_v0 = vld [vmem:[%s3607_s4 + $0x80] sm:$0xff] }
 0x45c   :  { %572 = vadd.xlane.f32.xlu0 %v571_v28  ;;  %2971 = vpow2.f32 %v557_v12 }
 0x45d   :  { %v3318_v13 = vpop.eup %2961 }
 0x45e   :  { %v3320_v16 = vpop.eup %2963  ;;  %v577_v33 = vsel %vm486_vm6, %v3318_v13, 0.0 }
 0x45f   :  { %v580_v17 = vsel %vm486_vm6, %v3320_v16, 0.0 }
 0x460   :  { %578 = vadd.xlane.f32.xlu0 %v577_v33  ;;  %581 = vadd.xlane.f32.xlu1 %v580_v17 }
 0x461   :  { %v3326_v20 = vpop.eup %2965 }
 0x462   :  { %v3328_v21 = vpop.eup %2967  ;;  %v583_v22 = vsel %vm486_vm6, %v3326_v20, 0.0 }
 0x463   :  { %v586_v23 = vsel %vm486_vm6, %v3328_v21, 0.0 }
 0x464   :  { %584 = vadd.xlane.f32.xlu0 %v583_v22  ;;  %587 = vadd.xlane.f32.xlu1 %v586_v23  ;;  %v644_v23 = vld [vmem:[%s3607_s4 + $0x98] sm:$0xff] }
 0x465   :  { %v3334_v24 = vpop.eup %2969 }
 0x466   :  { %v589_v25 = vsel %vm486_vm6, %v3334_v24, 0.0  ;;  %v3338_v26 = vpop.eup %2971 }
 0x467   :  { %v592_v29 = vsel %vm486_vm6, %v3338_v26, 0.0 }
 0x468   :  { %590 = vadd.xlane.f32.xlu1 %v589_v25 }
 0x46c   :  { %593 = vadd.xlane.f32.xlu1 %v592_v29 }
 0x47a   :  { %2922 = vrot.lane.b32.xlu0 %v2921_v6, %s3040_s1  ;;  %v2781_v6 = vpack.c.bf16 %v628_v63, %v627_v41 }
 0x47d   :  { %2927 = vrot.lane.b32.xlu1 %v2926_v8, %s3040_s1 }
 0x48c   :  { %v2575_v35 = vpop.f32.mrb[4].mxu1 }
 0x48d   :  { %v854_v36 = vadd.f32 %v2575_v35, %v2419_v30  ;;  %v848_v38 = vpop.f32.mrb[5].mxu1 }
 0x48e   :  { %v849_v40 = vadd.f32 %v2419_v30, %v848_v38  ;;  %v645_v38 = vld [vmem:[%s3607_s4 + $0xa0] sm:$0xff] }
 0x48f   :  { %v858_v7 = vmax.f32 %v854_v36, 0.0 }
 0x490   :  { %v857_v4 = vmax.f32 %v849_v40, 0.0  ;;  %v646_v40 = vld [vmem:[%s3607_s4 + $0xa8] sm:$0xff] }
 0x491   :  { %v2568_v8 = vpop.f32.mrb[4].mxu0 }
 0x492   :  { %v751_v42 = vpop.f32.mrb[5].mxu0  ;;  %2592 = vmatprep.mubr.msk.f32.mxu1 %vm859_vm0, %v857_v4  ;;  %v757_v55 = vadd.f32 %v2568_v8, %v2416_v5 }
 0x493   :  { %v752_v46 = vadd.f32 %v2416_v5, %v751_v42  ;;  %2593 = vmatmul.mubr.msk.f32.vlgmr.msra.gmra.mrb[6].mxu1 %vm859_vm0, %v858_v7  ;;  %v2805_v5 = vpack.c.bf16 %v646_v40, %v645_v38  ;;  %v649_v42 = vld [vmem:[%s3607_s4 + $0xc0] sm:$0xff]  ;;  %v662_v38 = vld [vmem:[%s3607_s4 + $0x128] sm:$0xff] }
 0x494   :  { %2780 = vmatpush3.bf16.msra.mxu1 %v3302_v43  ;;  %v761_v43 = vmax.f32 %v757_v55, 0.0  ;;  %v651_v55 = vld [vmem:[%s3607_s4 + $0xd0] sm:$0xff] }
 0x495   :  { %v760_v49 = vmax.f32 %v752_v46, 0.0  ;;  %2782 = vmatprep.subr.bf16.mxu1 %v2781_v6 }
 0x497   :  { %2611 = vmatprep.mubr.msk.f32.mxu1 %vm859_vm0, %v760_v49  ;;  %v2426_v49 = vld [vmem:[%s3606_s3 + $0x2] ss:$0 sm:$0xff] }
 0x498   :  { %2784 = vmatpush3.bf16.msra.mxu1 %v2781_v6 }
 0x499   :  { %2786 = vmatprep.subr.bf16.mxu1 %v2785_v50 }
 0x49c   :  { %2788 = vmatpush3.bf16.msra.mxu1 %v2785_v50 }
 0x49d   :  { %2790 = vmatprep.subr.bf16.mxu1 %v2789_v54 }
 0x4a0   :  { %2792 = vmatpush3.bf16.msra.mxu1 %v2789_v54 }
 0x4a1   :  { %2794 = vmatprep.subr.bf16.mxu1 %v3195_v10 }
 0x4a3   :  { %2612 = vmatmul.mubr.msk.f32.vlgmr.msra.gmra.mrb[6].mxu1 %vm859_vm0, %v761_v43  ;;  %v652_v43 = vld [vmem:[%s3607_s4 + $0xd8] sm:$0xff] }
 0x4a4   :  { %2796 = vmatpush3.bf16.msra.mxu1 %v3195_v10 }
 0x4e8   :  { %v576_v56 = vpop.xlane.xlu1 %575 }
 0x4e9   :  { %v573_v18 = vpop.xlane.xlu0 %572  ;;  %2973 = vrcp.f32 %v576_v56 }
 0x4ea   :  { %2975 = vrcp.f32 %v573_v18 }
 0x4ed   :  { %v579_v57 = vpop.xlane.xlu0 %578  ;;  %v582_v58 = vpop.xlane.xlu1 %581 }
 0x4ee   :  { %2977 = vrcp.f32 %v579_v57  ;;  %v2431_v57 = vld [vmem:[%s3606_s3 + $0x3] ss:$0 sm:$0xff] }
 0x4ef   :  { %2979 = vrcp.f32 %v582_v58  ;;  %v2821_v58 = vpack.c.bf16 %v652_v43, %v651_v55 }
 0x4f1   :  { %v585_v59 = vpop.xlane.xlu0 %584  ;;  %v588_v60 = vpop.xlane.xlu1 %587 }
 0x4f2   :  { %2981 = vrcp.f32 %v585_v59 }
 0x4f3   :  { %v2974_v34 = vpop.eup %2973  ;;  %2983 = vrcp.f32 %v588_v60  ;;  %v653_v60 = vld [vmem:[%s3607_s4 + $0xe0] sm:$0xff] }
 0x4f4   :  { %v2976_v31 = vpop.eup %2975  ;;  %v606_v61 = vmul.f32 %v2974_v34, %v3310_v37  ;;  %v642_v37 = vld [vmem:[%s3607_s4 + $0x88] sm:$0xff] }
 0x4f5   :  { %v591_v62 = vpop.xlane.xlu1 %590  ;;  %v2923_v1 = vpop.permute.xlu0 %2922  ;;  %v604_v10 = vmul.f32 %v2976_v31, %v3312_v11  ;;  %v643_v11 = vld [vmem:[%s3607_s4 + $0x90] sm:$0xff]  ;;  %v2797_v22 = vpack.c.bf16 %v642_v37, %v641_v0  ;;  %v654_v34 = vld [vmem:[%s3607_s4 + $0xe8] sm:$0xff]  ;;  %v657_v0 = vld [vmem:[%s3607_s4 + $0x100] sm:$0xff] }
 0x4f6   :  { %2985 = vrcp.f32 %v591_v62  ;;  %v2925_v2 = vunpack.i.h.bf16 %v2923_v1  ;;  %v2924_v32 = vunpack.i.l.bf16 %v2923_v1  ;;  %v2801_v25 = vpack.c.bf16 %v644_v23, %v643_v11  ;;  %v658_v37 = vld [vmem:[%s3607_s4 + $0x108] sm:$0xff]  ;;  %v2436_v11 = vld [vmem:[%s3606_s3 + $0x4] ss:$0 sm:$0xff] }
 0x4f7   :  { %2618 = vmatprep.mubr.msk.f32.mxu1 %vm486_vm6, %v604_v10  ;;  %2798 = vmatprep.subr.bf16.mxu0 %v2797_v22  ;;  %v2825_v62 = vpack.c.bf16 %v654_v34, %v653_v60 }
 0x4f8   :  { %v2978_v53 = vpop.eup %2977  ;;  %v2813_v12 = vpack.c.bf16 %v2925_v2, %v2924_v32  ;;  %2619 = vmatmul.mubr.msk.f32.vlgmr.msra.gmra.mrb[8].mxu1 %vm486_vm6, %v606_v61  ;;  %2800 = vmatpush3.bf16.msra.mxu0 %v2797_v22  ;;  %v655_v2 = vld [vmem:[%s3607_s4 + $0xf0] sm:$0xff]  ;;  %v656_v32 = vld [vmem:[%s3607_s4 + $0xf8] sm:$0xff]  ;;  %v2837_v22 = vpack.c.bf16 %v658_v37, %v657_v0 }
 0x4f9   :  { %v2980_v28 = vpop.eup %2979  ;;  %v594_v33 = vpop.xlane.xlu1 %593  ;;  %v608_v17 = vmul.f32 %v2978_v53, %v3318_v13  ;;  %2802 = vmatprep.subr.bf16.mxu0 %v2801_v25 }
 0x4fa   :  { %2987 = vrcp.f32 %v594_v33  ;;  %2814 = vmatprep.subr.bf16.mxu1 %v2813_v12  ;;  %v610_v30 = vmul.f32 %v2980_v28, %v3320_v16 }
 0x4fb   :  { %2816 = vmatpush3.bf16.msra.mxu1 %v2813_v12  ;;  %2644 = vmatprep.mubr.msk.f32.mxu1 %vm486_vm6, %v608_v17  ;;  %v2829_v12 = vpack.c.bf16 %v656_v32, %v655_v2 }
 0x4fc   :  { %v2982_v29 = vpop.eup %2981  ;;  %2834 = vmatprep.subr.bf16.mxu1 %v3123_v9  ;;  %2804 = vmatpush3.bf16.msra.mxu0 %v2801_v25  ;;  %v659_v25 = vld [vmem:[%s3607_s4 + $0x110] sm:$0xff] }
 0x4fd   :  { %v2984_v35 = vpop.eup %2983  ;;  %v2928_v36 = vpop.permute.xlu1 %2927  ;;  %v612_v13 = vmul.f32 %v2982_v29, %v3326_v20  ;;  %2806 = vmatprep.subr.bf16.mxu0 %v2805_v5  ;;  %v660_v29 = vld [vmem:[%s3607_s4 + $0x118] sm:$0xff] }
 0x4fe   :  { %v2930_v41 = vunpack.i.h.bf16 %v2928_v36  ;;  %v2929_v63 = vunpack.i.l.bf16 %v2928_v36  ;;  %2645 = vmatmul.mubr.msk.f32.vlgmr.msra.gmra.mrb[10].mxu1 %vm486_vm6, %v610_v30  ;;  %v614_v20 = vmul.f32 %v2984_v35, %v3328_v21  ;;  %v647_v21 = vld [vmem:[%s3607_s4 + $0xb0] sm:$0xff]  ;;  %v2841_v35 = vpack.c.bf16 %v660_v29, %v659_v25 }
 0x4ff   :  { %2836 = vmatpush3.bf16.msra.mxu1 %v3123_v9  ;;  %2670 = vmatprep.mubr.msk.f32.mxu1 %vm486_vm6, %v612_v13  ;;  %v661_v13 = vld [vmem:[%s3607_s4 + $0x120] sm:$0xff] }
 0x500   :  { %v2986_v16 = vpop.eup %2985  ;;  %v2853_v4 = vpack.c.bf16 %v2930_v41, %v2929_v63  ;;  %2808 = vmatpush3.bf16.msra.mxu0 %v2805_v5  ;;  %v2845_v40 = vpack.c.bf16 %v662_v38, %v661_v13  ;;  %v663_v41 = vld [vmem:[%s3607_s4 + $0x130] sm:$0xff]  ;;  %v664_v63 = vld [vmem:[%s3607_s4 + $0x138] sm:$0xff]  ;;  %v2441_v5 = vld [vmem:[%s3606_s3 + $0x5] ss:$0 sm:$0xff] }
 0x501   :  { %v616_v7 = vmul.f32 %v2986_v16, %v3334_v24  ;;  %v648_v24 = vld [vmem:[%s3607_s4 + $0xb8] sm:$0xff]  ;;  %v2849_v16 = vpack.c.bf16 %v664_v63, %v663_v41 }
 0x502   :  { %2671 = vmatmul.mubr.msk.f32.vlgmr.msra.gmra.mrb[12].mxu1 %vm486_vm6, %v614_v20  ;;  %2854 = vmatprep.subr.bf16.mxu1 %v2853_v4  ;;  %v2809_v6 = vpack.c.bf16 %v648_v24, %v647_v21  ;;  %v665_v20 = vld [vmem:[%s3607_s4 + $0x140] sm:$0xff]  ;;  %v667_v21 = vld [vmem:[%s3607_s4 + $0x150] sm:$0xff]  ;;  %v668_v24 = vld [vmem:[%s3607_s4 + $0x158] sm:$0xff] }
 0x503   :  { %2856 = vmatpush3.bf16.msra.mxu1 %v2853_v4  ;;  %2696 = vmatprep.mubr.msk.f32.mxu1 %vm486_vm6, %v616_v7  ;;  %v666_v4 = vld [vmem:[%s3607_s4 + $0x148] sm:$0xff] }
 0x504   :  { %v2988_v8 = vpop.eup %2987  ;;  %2810 = vmatprep.subr.bf16.mxu0 %v2809_v6 }
 0x505   :  { %v618_v9 = vmul.f32 %v2988_v8, %v3338_v26  ;;  %2812 = vmatpush3.bf16.msra.mxu0 %v2809_v6  ;;  %v650_v26 = vld [vmem:[%s3607_s4 + $0xc8] sm:$0xff]  ;;  %v2857_v8 = vpack.c.bf16 %v666_v4, %v665_v20 }
 0x506   :  { %v2817_v44 = vpack.c.bf16 %v650_v26, %v649_v42  ;;  %v2861_v42 = vpack.c.bf16 %v668_v24, %v667_v21 }
 0x507   :  { %2697 = vmatmul.mubr.msk.f32.vlgmr.msra.gmra.mrb[14].mxu1 %vm486_vm6, %v618_v9 }
 0x508   :  { %2818 = vmatprep.subr.bf16.mxu0 %v2817_v44 }
 0x576   :  { %v3429_v45 = vpop.f32.mrb[6].mxu1 }
 0x577   :  { %v3431_v46 = vpop.f32.mrb[7].mxu1 }
 0x5cb   :  { %v2620_v50 = vpop.f32.mrb[8].mxu1 }
 0x5cc   :  { %v1106_v51 = vadd.f32 %v2620_v50, %v2426_v49  ;;  %v1100_v52 = vpop.f32.mrb[9].mxu1 }
 0x5cd   :  { %v1101_v54 = vadd.f32 %v2426_v49, %v1100_v52  ;;  %v670_v49 = vld [vmem:[%s3607_s4 + $0x168] sm:$0xff]  ;;  %v672_v52 = vld [vmem:[%s3607_s4 + $0x178] sm:$0xff] }
 0x5ce   :  { %v1110_v18 = vmax.f32 %v1106_v51, 0.0  ;;  %v671_v51 = vld [vmem:[%s3607_s4 + $0x170] sm:$0xff] }
 0x5cf   :  { %v1109_v56 = vmax.f32 %v1101_v54, 0.0  ;;  %v2869_v54 = vpack.c.bf16 %v672_v52, %v671_v51 }
 0x5d1   :  { %2637 = vmatprep.mubr.msk.f32.mxu0 %vm859_vm0, %v1109_v56  ;;  %v2646_v59 = vpop.f32.mrb[10].mxu1 }
 0x5d2   :  { %2638 = vmatmul.mubr.msk.f32.vlgmr.msra.gmra.mrb[6].mxu0 %vm859_vm0, %v1110_v18  ;;  %v1280_v31 = vpop.f32.mrb[11].mxu1  ;;  %v1286_v17 = vadd.f32 %v2646_v59, %v2431_v57 }
 0x5d3   :  { %v1281_v61 = vadd.f32 %v2431_v57, %v1280_v31  ;;  %2820 = vmatpush3.bf16.msra.mxu0 %v2817_v44  ;;  %v669_v44 = vld [vmem:[%s3607_s4 + $0x160] sm:$0xff]  ;;  %s3043_s4 = smov 112  }
 0x5d4   :  { %2822 = vmatprep.subr.bf16.mxu0 %v2821_v58  ;;  %v1290_v30 = vmax.f32 %v1286_v17, 0.0  ;;  %v2865_v50 = vpack.c.bf16 %v670_v49, %v669_v44 }
 0x5d5   :  { %v1289_v1 = vmax.f32 %v1281_v61, 0.0  ;;  %v2672_v10 = vpop.f32.mrb[12].mxu1 }
 0x5d6   :  { %v1452_v53 = vpop.f32.mrb[13].mxu1  ;;  %v1458_v7 = vadd.f32 %v2672_v10, %v2436_v11 }
 0x5d7   :  { %2824 = vmatpush3.bf16.msra.mxu0 %v2821_v58  ;;  %2663 = vmatprep.mubr.msk.f32.mxu0 %vm859_vm0, %v1289_v1  ;;  %v1453_v23 = vadd.f32 %v2436_v11, %v1452_v53 }
 0x5d8   :  { %2826 = vmatprep.subr.bf16.mxu0 %v2825_v62  ;;  %v1462_v6 = vmax.f32 %v1458_v7, 0.0 }
 0x5d9   :  { %v1461_v36 = vmax.f32 %v1453_v23, 0.0 }
 0x5da   :  { %v2698_v28 = vpop.f32.mrb[14].mxu1 }
 0x5db   :  { %2828 = vmatpush3.bf16.msra.mxu0 %v2825_v62  ;;  %v1632_v33 = vpop.f32.mrb[15].mxu1  ;;  %v1638_v55 = vadd.f32 %v2698_v28, %v2441_v5 }
 0x5dc   :  { %2830 = vmatprep.subr.bf16.mxu0 %v2829_v12  ;;  %v1633_v9 = vadd.f32 %v2441_v5, %v1632_v33 }
 0x5dd   :  { %v1642_v43 = vmax.f32 %v1638_v55, 0.0 }
 0x5de   :  { %v1641_v26 = vmax.f32 %v1633_v9, 0.0 }
 0x5df   :  { %2832 = vmatpush3.bf16.msra.mxu0 %v2829_v12 }
 0x5e0   :  { %2838 = vmatprep.subr.bf16.mxu0 %v2837_v22 }
 0x5e2   :  { %2664 = vmatmul.mubr.msk.f32.vlgmr.msra.gmra.mrb[6].mxu0 %vm859_vm0, %v1290_v30 }
 0x5e3   :  { %2840 = vmatpush3.bf16.msra.mxu0 %v2837_v22  ;;  %2689 = vmatprep.mubr.msk.f32.mxu0 %vm859_vm0, %v1461_v36 }
 0x5e4   :  { %2842 = vmatprep.subr.bf16.mxu0 %v2841_v35 }
 0x5e7   :  { %2844 = vmatpush3.bf16.msra.mxu0 %v2841_v35 }
 0x5e8   :  { %2846 = vmatprep.subr.bf16.mxu0 %v2845_v40 }
 0x5eb   :  { %2848 = vmatpush3.bf16.msra.mxu0 %v2845_v40 }
 0x5ec   :  { %2850 = vmatprep.subr.bf16.mxu0 %v2849_v16 }
 0x5ef   :  { %2852 = vmatpush3.bf16.msra.mxu0 %v2849_v16 }
 0x5f0   :  { %2858 = vmatprep.subr.bf16.mxu0 %v2857_v8 }
 0x5f2   :  { %2690 = vmatmul.mubr.msk.f32.vlgmr.msra.gmra.mrb[6].mxu0 %vm859_vm0, %v1462_v6 }
 0x5f3   :  { %2860 = vmatpush3.bf16.msra.mxu0 %v2857_v8  ;;  %2715 = vmatprep.mubr.msk.f32.mxu0 %vm859_vm0, %v1641_v26 }
 0x5f4   :  { %2862 = vmatprep.subr.bf16.mxu0 %v2861_v42 }
 0x5f7   :  { %2864 = vmatpush3.bf16.msra.mxu0 %v2861_v42 }
 0x5f8   :  { %2866 = vmatprep.subr.bf16.mxu0 %v2865_v50 }
 0x5fb   :  { %2868 = vmatpush3.bf16.msra.mxu0 %v2865_v50 }
 0x5fc   :  { %2870 = vmatprep.subr.bf16.mxu0 %v2869_v54 }
 0x5ff   :  { %2872 = vmatpush3.bf16.msra.mxu0 %v2869_v54 }
 0x602   :  { %2716 = vmatmul.mubr.msk.f32.vlgmr.msra.gmra.mrb[6].mxu0 %vm859_vm0, %v1642_v43 }
 0x6d5   :  { %v2717_v56 = vpop.f32.mrb[6].mxu0 }
 0x6d6   :  { %v2891_v18 = vadd.f32 %v2717_v56, %v3429_v45  ;;  %v1715_v57 = vpop.f32.mrb[7].mxu0 }
 0x6d7   :  { %v2892_v58 = vadd.f32 %v1715_v57, %v3431_v46 }
 0x6d9   :  { %1728 = vrot.lane.b32.xlu1 %v2892_v58, %s3041_s12  ;;  %1766 = vrot.lane.b32.xlu0 %v2892_v58, %s3042_s13  ;;  %v3521_v59 = vpack.i.bf16 %v2891_v18, %v2892_v58  ;;  %v3523_v60 = vpack.c.bf16 %v2891_v18, %v2892_v58 }
 0x6dd   :  { %1768 = vrot.lane.b32.xlu0 %v2891_v18, %s3042_s13 }
 0x6e1   :  { %1730 = vrot.lane.b32.xlu0 %v2891_v18, %s3041_s12 }
 0x74b   :  { %v1767_v34 = vpop.permute.xlu0 %1766  ;;  %v1729_v61 = vpop.permute.xlu1 %1728 }
 0x74c   :  { %1772 = vxpose.xlu1.b32.start [1/2] (short) (narrow) %v1767_v34, 8 }
 0x74f   :  { %v1769_v31 = vpop.permute.xlu0 %1768 }
 0x750   :  { %1773 = vxpose.xlu1.b32.end [2/2] (short) (narrow) %v1769_v31, 8 }
 0x753   :  { %v1731_v10 = vpop.permute.xlu0 %1730 }
 0x7cc   :  { %v1788_v62 = vpop.trf.xlu1 }
 0x7cd   :  { %v1818_v45 = vrot.slane %v1788_v62, %v291_v15  ;;  %v1807_v46 = vrot.slane %v1788_v62, %v3138_v19  ;;  %v1829_v1 = vrot.slane %v1788_v62, %v302_v39 }
 0x7cf   :  { %1820 = vbcast.lane.b32.xlu0 %v1818_v45, 256  ;;  %1809 = vbcast.lane.b32.xlu1 %v1807_v46, 256 }
 0x7d3   :  { %1824 = vbcast.lane.b32.xlu0 %v1818_v45, 264 }
 0x7d7   :  { %1831 = vbcast.lane.b32.xlu0 %v1829_v1, 256 }
 0x7db   :  { %1835 = vbcast.lane.b32.xlu0 %v1829_v1, 264 }
 0x7f9   :  { %1734 = vxpose.xlu0.b32.start [1/2] (short) (narrow) %v1729_v61, 8 }
 0x7fd   :  { %1735 = vxpose.xlu0.b32.end [2/2] (short) (narrow) %v1731_v10, 8 }
 0x826   :  { %1813 = vbcast.lane.b32.xlu0 %v1807_v46, 264 }
 0x841   :  { %v1821_v2 = vpop.permute.xlu0 %1820  ;;  %v1810_v36 = vpop.permute.xlu1 %1809 }
 0x845   :  { %v1825_v32 = vpop.permute.xlu0 %1824 }
 0x849   :  { %v1832_v53 = vpop.permute.xlu0 %1831 }
 0x84d   :  { %v1836_v12 = vpop.permute.xlu0 %1835 }
 0x879   :  { %v1750_v0 = vpop.trf.xlu0 }
 0x87a   :  { %v1844_v15 = vrot.slane %v1750_v0, %v3148_v27 }
 0x87c   :  { %v1845_v37 = vcombine.high %v1844_v15, %v1844_v15  ;;  %v1852_v11 = vrot.slane %v1844_v15, %v3148_v27 }
 0x87e   :  { %v1859_v28 = vrot.slane %v1845_v37, %v3148_v27  ;;  %v1860_v14 = vcombine.high %v1852_v11, %v1852_v11  ;;  %v1864_v17 = vrot.slane %v1852_v11, %v3138_v19 }
 0x880   :  { %v1868_v39 = vrot.slane %v1859_v28, %v3138_v19  ;;  %v1872_v33 = vrot.slane %v1860_v14, %v3138_v19  ;;  %v1876_v38 = vadd.f32 %v1864_v17, %v1810_v36 }
 0x882   :  { %v1879_v22 = vadd.f32 %v1868_v39, %v1825_v32  ;;  %v1878_v23 = vadd.f32 %v1868_v39, %v1821_v2  ;;  %v1880_v25 = vadd.f32 %v1872_v33, %v1832_v53  ;;  %v1881_v29 = vadd.f32 %v1872_v33, %v1836_v12 }
 0x883   :  { %v1888_v8 = vmul.f32 0.2, %v1876_v38  ;;  %vm1882_vm8 = vcmp.ge.f32.partialorder %v1876_v38, 0.0 }
 0x884   :  { %vm1885_vm1 = vcmp.ge.f32.partialorder %v1879_v22, 0.0  ;;  %v1891_v30 = vmul.f32 0.2, %v1879_v22  ;;  %vm1884_vm2 = vcmp.ge.f32.partialorder %v1878_v23, 0.0  ;;  %v1890_v35 = vmul.f32 0.2, %v1878_v23 }
 0x885   :  { %vm1886_vm3 = vcmp.ge.f32.partialorder %v1880_v25, 0.0  ;;  %v1892_v13 = vmul.f32 0.2, %v1880_v25  ;;  %v1893_v41 = vmul.f32 0.2, %v1881_v29  ;;  %vm1887_vm7 = vcmp.ge.f32.partialorder %v1881_v29, 0.0 }
 0x886   :  { %v1897_v27 = vsel %vm1885_vm1, %v1879_v22, %v1891_v30  ;;  %v1896_v40 = vsel %vm1884_vm2, %v1878_v23, %v1890_v35  ;;  %v1894_v24 = vsel %vm1882_vm8, %v1876_v38, %v1888_v8 }
 0x887   :  { %v1903_v63 = vsel %vm3171_vm5, %v1897_v27, -1e+30  ;;  %v1902_v19 = vsel %vm3167_vm4, %v1896_v40, -1e+30  ;;  %v1898_v16 = vsel %vm1886_vm3, %v1880_v25, %v1892_v13  ;;  %v1899_v7 = vsel %vm1887_vm7, %v1881_v29, %v1893_v41 }
 0x888   :  { %v1915_v20 = vsel %vm486_vm6, %v1903_v63, -inf  ;;  %v1912_v4 = vsel %vm486_vm6, %v1902_v19, -inf  ;;  %v1904_v5 = vsel %vm3167_vm4, %v1898_v16, -1e+30  ;;  %v1905_v21 = vsel %vm3171_vm5, %v1899_v7, -1e+30 }
 0x889   :  { %1916 = vmax.xlane.f32.xlu0 %v1915_v20  ;;  %1913 = vmax.xlane.f32.xlu1 %v1912_v4  ;;  %v1918_v9 = vsel %vm486_vm6, %v1904_v5, -inf  ;;  %v1921_v6 = vsel %vm486_vm6, %v1905_v21, -inf  ;;  %v1900_v42 = vsel %vm3167_vm4, %v1894_v24, -1e+30  ;;  %vm3046_vm4 = vmmov 0  }
 0x88a   :  { %v1906_v26 = vsel %vm486_vm6, %v1900_v42, -inf }
 0x88d   :  { %1919 = vmax.xlane.f32.xlu1 %v1918_v9 }
 0x891   :  { %1922 = vmax.xlane.f32.xlu1 %v1921_v6 }
 0x895   :  { %1907 = vmax.xlane.f32.xlu1 %v1906_v26 }
 0x898   :  { %v1814_v44 = vpop.permute.xlu0 %1813 }
 0x899   :  { %v1877_v49 = vadd.f32 %v1864_v17, %v1814_v44  ;;  %v3045_v44 = vmov 0.0|0.0  }
 0x89b   :  { %v1889_v50 = vmul.f32 0.2, %v1877_v49  ;;  %vm1883_vm9 = vcmp.ge.f32.partialorder %v1877_v49, 0.0 }
 0x89d   :  { %v1895_v51 = vsel %vm1883_vm9, %v1877_v49, %v1889_v50  ;;  %v2452_v50 = vld [vmem:[%s3608_s5] ss:$0 sm:$0xff] }
 0x89e   :  { %v1901_v52 = vsel %vm3171_vm5, %v1895_v51, -1e+30  ;;  %vm2396_vm5 = vcmask 17408  }
 0x89f   :  { %v1909_v54 = vsel %vm486_vm6, %v1901_v52, -inf }
 0x8a0   :  { %1910 = vmax.xlane.f32.xlu1 %v1909_v54 }
 0x916   :  { %v1914_v55 = vpop.xlane.xlu1 %1913  ;;  %v1917_v43 = vpop.xlane.xlu0 %1916 }
 0x917   :  { %v1926_v56 = vsub.f32 %v1902_v19, %v1914_v55  ;;  %v1927_v18 = vsub.f32 %v1903_v63, %v1917_v43  ;;  %v2314_v43 = vld [vmem:[%s3610_s7] sm:$0xff] }
 0x919   :  { %v1934_v47 = vmul.f32 1.442695, %v1926_v56  ;;  %v1936_v57 = vmul.f32 1.442695, %v1927_v18  ;;  %v2315_v56 = vld [vmem:[%s3610_s7 + $0x8] sm:$0xff] }
 0x91a   :  { %v1920_v58 = vpop.xlane.xlu1 %1919 }
 0x91b   :  { %2989 = vpow2.f32 %v1934_v47  ;;  %v1928_v34 = vsub.f32 %v1904_v5, %v1920_v58  ;;  %v2240_v47 = vld [vmem:[%s3609_s6] sm:$0x3]  ;;  %s3013_s6 = scalar_lea.vmem %s2405_s22, 32 }
 0x91c   :  { %2991 = vpow2.f32 %v1936_v57  ;;  %v2889_v57 = vpack.c.bf16 %v2315_v56, %v2314_v43  ;;  %p3014_p0 = scmp.ne.s32.totalorder %s2405_s22, %s3013_s6  ;;  %p3019_p2 = scmp.lt.s32.totalorder %s3013_s6, %s3013_s6 }
 0x91d   :  { %v1938_v31 = vmul.f32 1.442695, %v1928_v34 }
 0x91e   :  { %v1923_v61 = vpop.xlane.xlu1 %1922  ;;  %p3020_p3 = por %p3019_p2, %p3018_p1 }
 0x91f   :  { %2993 = vpow2.f32 %v1938_v31  ;;  %v1929_v62 = vsub.f32 %v1905_v21, %v1923_v61  ;;  %v2454_v31 = vld [vmem:[%s3611_s8] ss:$0 sm:$0xff] }
 0x920   :  { %p3021_p4 = pnand %p3020_p3, %p3014_p0 }
 0x921   :  { %v1940_v45 = vmul.f32 1.442695, %v1929_v62 }
 0x922   :  { %v1908_v48 = vpop.xlane.xlu1 %1907 }
 0x923   :  { %2995 = vpow2.f32 %v1940_v45  ;;  %v1924_v46 = vsub.f32 %v1900_v42, %v1908_v48 }
 0x925   :  { %v2990_v1 = vpop.eup %2989  ;;  %v1930_v10 = vmul.f32 1.442695, %v1924_v46 }
 0x926   :  { %v2992_v2 = vpop.eup %2991  ;;  %v1948_v32 = vsel %vm486_vm6, %v2990_v1, 0.0 }
 0x927   :  { %2997 = vpow2.f32 %v1930_v10  ;;  %1949 = vadd.xlane.f32.xlu0 %v1948_v32  ;;  %v1951_v53 = vsel %vm486_vm6, %v2992_v2, 0.0 }
 0x928   :  { %1952 = vadd.xlane.f32.xlu1 %v1951_v53 }
 0x929   :  { %v2994_v12 = vpop.eup %2993 }
 0x92a   :  { %v1954_v0 = vsel %vm486_vm6, %v2994_v12, 0.0 }
 0x92b   :  { %1955 = vadd.xlane.f32.xlu0 %v1954_v0 }
 0x92d   :  { %v2996_v15 = vpop.eup %2995  ;;  %v1911_v37 = vpop.xlane.xlu1 %1910 }
 0x92e   :  { %v1925_v11 = vsub.f32 %v1901_v52, %v1911_v37  ;;  %v1957_v28 = vsel %vm486_vm6, %v2996_v15, 0.0 }
 0x92f   :  { %1958 = vadd.xlane.f32.xlu1 %v1957_v28 }
 0x930   :  { %v1932_v14 = vmul.f32 1.442695, %v1925_v11 }
 0x931   :  { %v2998_v39 = vpop.eup %2997 }
 0x932   :  { %2999 = vpow2.f32 %v1932_v14  ;;  %v1942_v33 = vsel %vm486_vm6, %v2998_v39, 0.0 }
 0x933   :  { %1943 = vadd.xlane.f32.xlu0 %v1942_v33 }
 0x93c   :  { %v3000_v17 = vpop.eup %2999 }
 0x93d   :  { %v1945_v22 = vsel %vm486_vm6, %v3000_v17, 0.0 }
 0x93e   :  { %1946 = vadd.xlane.f32.xlu1 %v1945_v22 }
 0x949   :  { %2932 = vrot.lane.b32.xlu0 %v3521_v59, %s3043_s4 }
 0x94f   :  { %2937 = vrot.lane.b32.xlu1 %v3521_v59, %s3044_s14 }
 0x9b4   :  { %v1950_v23 = vpop.xlane.xlu0 %1949 }
 0x9b5   :  { %3001 = vrcp.f32 %v1950_v23  ;;  %v1953_v25 = vpop.xlane.xlu1 %1952 }
 0x9b6   :  { %3003 = vrcp.f32 %v1953_v25 }
 0x9b8   :  { %v1956_v29 = vpop.xlane.xlu0 %1955 }
 0x9b9   :  { %3005 = vrcp.f32 %v1956_v29 }
 0x9bc   :  { %v1959_v40 = vpop.xlane.xlu1 %1958 }
 0x9bd   :  { %3007 = vrcp.f32 %v1959_v40 }
 0x9bf   :  { %v3002_v30 = vpop.eup %3001 }
 0x9c0   :  { %v1944_v35 = vpop.xlane.xlu0 %1943  ;;  %v1965_v36 = vmul.f32 %v3002_v30, %v2990_v1  ;;  %v3004_v63 = vpop.eup %3003 }
 0x9c1   :  { %3009 = vrcp.f32 %v1944_v35  ;;  %v1967_v59 = vmul.f32 %v3004_v63, %v2992_v2 }
 0x9c2   :  { %2722 = vmatprep.mubr.msk.f32.mxu1 %vm486_vm6, %v1965_v36 }
 0x9c3   :  { %v3006_v19 = vpop.eup %3005 }
 0x9c4   :  { %v2933_v13 = vpop.permute.xlu0 %2932  ;;  %v1969_v20 = vmul.f32 %v3006_v19, %v2994_v12 }
 0x9c5   :  { %v2935_v38 = vunpack.i.h.bf16 %v2933_v13  ;;  %v2934_v27 = vunpack.i.l.bf16 %v2933_v13 }
 0x9c7   :  { %v2873_v41 = vpack.c.bf16 %v2935_v38, %v2934_v27  ;;  %v3008_v9 = vpop.eup %3007 }
 0x9c8   :  { %v1971_v24 = vmul.f32 %v3008_v9, %v2996_v15 }
 0x9c9   :  { %2874 = vmatprep.subr.bf16.mxu1 %v2873_v41 }
 0x9ca   :  { %2876 = vmatpush3.bf16.msra.mxu1 %v2873_v41 }
 0x9cb   :  { %v1947_v16 = vpop.xlane.xlu1 %1946  ;;  %v3010_v21 = vpop.eup %3009 }
 0x9cc   :  { %3011 = vrcp.f32 %v1947_v16  ;;  %v1961_v6 = vmul.f32 %v3010_v21, %v2998_v39 }
 0x9cd   :  { %2723 = vmatmul.mubr.msk.f32.vlgmr.msra.gmra.mrb[16].mxu1 %vm486_vm6, %v1967_v59 }
 0x9ce   :  { %2729 = vmatprep.mubr.msk.f32.mxu1 %vm486_vm6, %v1969_v20 }
 0x9cf   :  { %v2938_v4 = vpop.permute.xlu1 %2937 }
 0x9d0   :  { %v2940_v5 = vunpack.i.h.bf16 %v2938_v4  ;;  %v2939_v7 = vunpack.i.l.bf16 %v2938_v4 }
 0x9d2   :  { %v2877_v8 = vpack.c.bf16 %v2940_v5, %v2939_v7 }
 0x9d4   :  { %2878 = vmatprep.subr.bf16.mxu1 %v2877_v8 }
 0x9d5   :  { %2880 = vmatpush3.bf16.msra.mxu1 %v2877_v8 }
 0x9d6   :  { %2882 = vmatprep.subr.bf16.mxu1 %v3523_v60  ;;  %v3012_v42 = vpop.eup %3011 }
 0x9d7   :  { %v1963_v26 = vmul.f32 %v3012_v42, %v3000_v17 }
 0x9d8   :  { %2730 = vmatmul.mubr.msk.f32.vlgmr.msra.gmra.mrb[16].mxu1 %vm486_vm6, %v1971_v24 }
 0x9d9   :  { %2884 = vmatpush3.bf16.msra.mxu1 %v3523_v60  ;;  %2736 = vmatprep.mubr.msk.f32.mxu1 %vm486_vm6, %v1961_v6 }
 0x9da   :  { %2885 = vmatprep.subr.bf16.mxu1 %v3045_v44 }
 0x9e0   :  { %2737 = vmatmul.mubr.msk.f32.vlgmr.msra.gmra.mrb[16].mxu1 %vm486_vm6, %v1963_v26 }
 0x9e1   :  { %2743 = vmatprep.mubr.msk.f32.mxu1 %vm3046_vm4, %v3037_v3 }
 0xab3   :  { %v2738_v49 = vpop.f32.mrb[16].mxu1 }
 0xab4   :  { %v2230_v51 = vmul.f32 0.33333334, %v2738_v49  ;;  %v2218_v52 = vpop.f32.mrb[17].mxu1 }
 0xab5   :  { %v2229_v60 = vmul.f32 0.33333334, %v2218_v52 }
 0xab6   :  { %v2239_v54 = vadd.f32 %v2452_v50, %v2230_v51 }
 0xab7   :  { %v2238_v55 = vadd.f32 %v2452_v50, %v2229_v60 }
 0xab9   :  { %v2886_v18 = vpack.c.bf16 %v2239_v54, %v2238_v55 }
 0xabb   :  { %2887 = vmatpush3.bf16.msra.mxu1 %v2886_v18 }
 0xabc   :  { %2888 = vmatprep.subr.bf16.mxu1 %v3045_v44 }
 0xabe   :  { %2744 = vmatmul.mubr.msk.f32.vlgmr.msra.gmra.mrb[18].mxu1 %vm486_vm6, %v2240_v47 }
 0xabf   :  { %2890 = vmatpush3.bf16.msra.mxu1 %v2889_v57  ;;  %2750 = vmatprep.mubr.msk.f32.mxu1 %vm3046_vm4, %v3037_v3 }
 0xb91   :  { %v2310_v58 = vpop.f32.mrb[18].mxu1 }
 0xb92   :  { %v2745_v34 = vpop.f32.mrb[19].mxu1  ;;  %2751 = vmatmul.mubr.msk.f32.vlgmr.msra.gmra.mrb[20].mxu1 %vm486_vm6, %v2310_v58 }
 0xc65   :  { %v2392_v61 = vpop.f32.mrb[20].mxu1 }
 0xc66   :  { %v2393_v62 = vadd.f32 %v2454_v31, %v2392_v61  ;;  %v2752_v45 = vpop.f32.mrb[21].mxu1 }
 0xc68   :  { %2397 = vst.msk [vmem:[#allocation2] sm:$0x3] %vm2396_vm5, %v2393_v62 }
 0xc69   :  { %3024 = shalt.err (!%p3021_p4)
}
 0xc6a   :  { %s3025_s25 = scalar_lea.hbm %s3612_s9, 32 }
 0xc6b   :  { %p3026_p5 = scmp.ne.s32.totalorder %s3612_s9, %s3025_s25  ;;  %p3029_p6 = scmp.lt.u32.totalorder %s3025_s25, %s3612_s9 }
 0xc6d   :  { %p3031_p7 = pnand %p3029_p6, %p3026_p5 }
 0xc6f   :  { %3034 = shalt.err (!%p3031_p7)
}
 0xc70   :  { %2407 = dma.vmem_to_hbm [thread:$0]  %s2405_s22, 32, %s3612_s9, [#allocation3]  }
 0xc71   :  { %3035 = dma.done.wait [#allocation3], 32  }
 0xc72   :  { %3036 = vsyncadd [#allocation3], 4294967264 }
 0xc73   :  { %2411 = vsyncpa [#allocation3], 1 }

</bundles_post_ra>
